<compile_context>
chip_gen: v7x
topology: tpu7x:2x2x1
jax: 0.10.0
libtpu: 0.0.40
codegen_flags: <defaults>
</compile_context>

<pallas_src>
import functools
import math

import jax
import jax.numpy as jnp
from jax.experimental import pallas as pl
from jax.experimental.pallas import tpu as pltpu

LN_EPS = 1e-5  # PyTorch nn.LayerNorm default


def _layer_norm(x, gamma, beta):
    # Two-pass statistics (better numerical parity than E[x^2]-mean^2).
    mean = jnp.mean(x, axis=-1, keepdims=True)
    xc = x - mean
    var = jnp.mean(xc * xc, axis=-1, keepdims=True)
    return xc * jax.lax.rsqrt(var + LN_EPS) * gamma + beta


def encoder_stack_kernel(x_ref,
                         wqkv_ref, bqkv_ref, wo_ref, bo_ref,
                         g1_ref, be1_ref,
                         w1_ref, b1_ref, w2_ref, b2_ref,
                         g2_ref, be2_ref,
                         gf_ref, bf_ref,
                         o_ref,
                         act_ref,
                         *, num_heads, b_tile, seq_len):
    layer = pl.program_id(1)
    num_layers = pl.num_programs(1)

    # Load the activation slab into resident VMEM scratch on the first layer.
    @pl.when(layer == 0)
    def _():
        act_ref[...] = x_ref[...].astype(jnp.float32)

    x = act_ref[...]                       # (M, D) f32, resident across layers
    M, D = x.shape
    H = num_heads
    dh = D // H
    S = seq_len
    BT = b_tile
    cdt = wqkv_ref.dtype                   # MXU input dtype (bf16), f32 accumulate

    # ---------------- Multi-head self-attention ----------------
    # Single full-contraction QKV projection: (M, D) @ (D, 3D).
    # Q weights/bias are pre-scaled by 1/sqrt(dh) in the wrapper.
    proj = jnp.dot(x.astype(cdt), wqkv_ref[...],
                   preferred_element_type=jnp.float32) + bqkv_ref[...]   # (M, 3D)
    projc = proj.astype(cdt).reshape(BT, S, 3 * D)   # single cast, leading split

    def split_heads(base):
        # Per-head lane slices stacked along a new leading batch axis:
        # (BT, S, dh) x H  ->  (H*BT, S, dh).  Pure data movement.
        parts = [projc[:, :, base + h * dh: base + (h + 1) * dh] for h in range(H)]
        return jnp.stack(parts, axis=0).reshape(H * BT, S, dh)

    qh = split_heads(0)                     # already scaled
    kh = split_heads(D)
    vh = split_heads(2 * D)

    s = jnp.einsum('bqd,bkd->bqk', qh, kh,
                   preferred_element_type=jnp.float32)        # (H*BT, S, S)
    s = s - jnp.max(s, axis=-1, keepdims=True)
    p = jnp.exp(s)
    p = p * pl.reciprocal(jnp.sum(p, axis=-1, keepdims=True), approx=True)

    ctx = jnp.einsum('bqk,bkd->bqd', p.astype(cdt), vh,
                     preferred_element_type=jnp.float32)      # (H*BT, S, dh)
    # Head-major -> feature-major: (H, BT, S, dh) -> concat over heads on the
    # lane axis -> (BT, S, D) -> (M, D).  Fuses the head-sum into one matmul.
    ctx4 = ctx.reshape(H, BT, S, dh)
    ctx2d = jnp.concatenate([ctx4[h] for h in range(H)], axis=-1).reshape(M, D)

    attn = jnp.dot(ctx2d.astype(cdt), wo_ref[...],
                   preferred_element_type=jnp.float32) + bo_ref[...]     # (M, D)

    x1 = _layer_norm(x + attn, g1_ref[...], be1_ref[...])

    # ---------------- Feed-forward (ReLU) ----------------
    h1 = jnp.dot(x1.astype(cdt), w1_ref[...],
                 preferred_element_type=jnp.float32) + b1_ref[...]
    h1 = jnp.maximum(h1, 0.0)
    ff = jnp.dot(h1.astype(cdt), w2_ref[...],
                 preferred_element_type=jnp.float32) + b2_ref[...]
    x2 = _layer_norm(x1 + ff, g2_ref[...], be2_ref[...])

    act_ref[...] = x2

    # Final LayerNorm fused into the last layer step; output written once per
    # batch tile (canonical accumulator pattern across the "arbitrary" axis).
    @pl.when(layer == num_layers - 1)
    def _():
        o_ref[...] = _layer_norm(x2, gf_ref[...], bf_ref[...]).astype(o_ref.dtype)


def _choose_batch_tile(batch, seq, target_m=256, max_m=1024):
    """Smallest divisor of `batch` with B_TILE*S >= target_m (MXU rows); else
    the largest divisor that keeps the token slab below max_m rows."""
    best = 1
    for bt in range(1, batch + 1):
        if batch % bt != 0 or bt * seq > max_m:
            continue
        best = bt
        if bt * seq >= target_m:
            break
    return best


def _vmem_limit_bytes():
    """Chip-aware scoped-VMEM budget: ~3/4 of physical, capped at 100 MiB
    (v5e/v6e: 128 MiB physical -> ~96 MiB; v7x: 64 MiB -> ~48 MiB)."""
    try:
        cap = pltpu.get_tpu_info().vmem_capacity_bytes
    except Exception:
        cap = 64 * 1024 * 1024
    return int(min(cap * 3 // 4, 100 * 1024 * 1024))


def encoder_forward(x, stacked, num_heads, mask=None, b_tile=None):
    if mask is not None:
        # TODO(synk): attention mask path not implemented.
        raise NotImplementedError("mask is not supported by this kernel")
    B, S, D = x.shape
    L = stacked["w_qkv"].shape[0]
    F = stacked["w1"].shape[-1]

    bt = b_tile if b_tile is not None else _choose_batch_tile(B, S)
    assert B % bt == 0, "b_tile must divide batch"
    nbt = B // bt
    M = bt * S

    # Fold batch into the matmul M dimension (free, contiguous reshape).
    x_t = x.reshape(nbt, M, D)

    sq = pl.Squeezed()
    in_specs = [
        pl.BlockSpec((sq, M, D), lambda b, l: (b, 0, 0)),        # x (fetched once per batch tile)
        pl.BlockSpec((sq, D, 3 * D), lambda b, l: (l, 0, 0)),    # w_qkv (Q pre-scaled)
        pl.BlockSpec((sq, 1, 3 * D), lambda b, l: (l, 0, 0)),    # b_qkv
        pl.BlockSpec((sq, D, D), lambda b, l: (l, 0, 0)),        # w_o
        pl.BlockSpec((sq, 1, D), lambda b, l: (l, 0, 0)),        # b_o
        pl.BlockSpec((sq, 1, D), lambda b, l: (l, 0, 0)),        # ln1 gamma
        pl.BlockSpec((sq, 1, D), lambda b, l: (l, 0, 0)),        # ln1 beta
        pl.BlockSpec((sq, D, F), lambda b, l: (l, 0, 0)),        # w1
        pl.BlockSpec((sq, 1, F), lambda b, l: (l, 0, 0)),        # b1
        pl.BlockSpec((sq, F, D), lambda b, l: (l, 0, 0)),        # w2
        pl.BlockSpec((sq, 1, D), lambda b, l: (l, 0, 0)),        # b2
        pl.BlockSpec((sq, 1, D), lambda b, l: (l, 0, 0)),        # ln2 gamma
        pl.BlockSpec((sq, 1, D), lambda b, l: (l, 0, 0)),        # ln2 beta
        pl.BlockSpec((1, D), lambda b, l: (0, 0)),               # final gamma
        pl.BlockSpec((1, D), lambda b, l: (0, 0)),               # final beta
    ]

    out = pl.pallas_call(
        functools.partial(encoder_stack_kernel,
                          num_heads=num_heads, b_tile=bt, seq_len=S),
        out_shape=jax.ShapeDtypeStruct((nbt, M, D), x.dtype),
        grid_spec=pltpu.PrefetchScalarGridSpec(
            num_scalar_prefetch=0,
            grid=(nbt, L),                                  # batch tiles outer, layers inner
            in_specs=in_specs,
            out_specs=pl.BlockSpec((sq, M, D), lambda b, l: (b, 0, 0)),
            scratch_shapes=[pltpu.VMEM((M, D), jnp.float32)],   # resident activations
        ),
        compiler_params=pltpu.CompilerParams(
            dimension_semantics=("parallel", "arbitrary"),
            vmem_limit_bytes=_vmem_limit_bytes(),
        ),
    )(x_t,
      stacked["w_qkv"], stacked["b_qkv"], stacked["w_o"], stacked["b_o"],
      stacked["ln1_g"], stacked["ln1_b"],
      stacked["w1"], stacked["b1"], stacked["w2"], stacked["b2"],
      stacked["ln2_g"], stacked["ln2_b"],
      stacked["final_g"], stacked["final_b"])
    return out.reshape(B, S, D)


# ---------------- parameter construction / preparation ----------------
def init_params(key, num_layers, embed_dims, ffn_dims):
    """Deterministic synthetic parameters (PyTorch-like shapes, f32)."""
    layers = []
    for _ in range(num_layers):
        p = {}
        for name, shape in (("wq", (embed_dims, embed_dims)),
                            ("wk", (embed_dims, embed_dims)),
                            ("wv", (embed_dims, embed_dims)),
                            ("wo", (embed_dims, embed_dims)),
                            ("w1", (embed_dims, ffn_dims)),
                            ("w2", (ffn_dims, embed_dims))):
            key, sub = jax.random.split(key)
            p[name] = (0.02 * jax.random.normal(sub, shape)).astype(jnp.float32)
        for name, dim in (("bq", embed_dims), ("bk", embed_dims), ("bv", embed_dims),
                          ("bo", embed_dims), ("b1", ffn_dims), ("b2", embed_dims)):
            key, sub = jax.random.split(key)
            p[name] = (0.02 * jax.random.normal(sub, (dim,))).astype(jnp.float32)
        p["g1"] = jnp.ones((embed_dims,), jnp.float32)
        p["be1"] = jnp.zeros((embed_dims,), jnp.float32)
        p["g2"] = jnp.ones((embed_dims,), jnp.float32)
        p["be2"] = jnp.zeros((embed_dims,), jnp.float32)
        layers.append(p)
    final = {"gamma": jnp.ones((embed_dims,), jnp.float32),
             "beta": jnp.zeros((embed_dims,), jnp.float32)}
    return layers, final


def prepare_params(layer_params, final_params, num_heads,
                   compute_dtype=jnp.bfloat16):
    """Stack per-layer params with a leading layer axis.  Q/K/V weights are
    concatenated column-wise into one (D, 3D) slab (so the kernel does a single
    full-contraction QKV matmul); the 1/sqrt(dh) scale is folded into the Q
    block.  Matmul weights are cast to bf16; biases / LN params stay f32.
    Runs once at setup in plain XLA."""
    D = layer_params[0]["wq"].shape[0]
    F = layer_params[0]["w1"].shape[1]
    H = num_heads
    assert D % H == 0, "embed_dims must be divisible by num_heads"
    dh = D // H
    scale = 1.0 / math.sqrt(dh)

    w_qkv, b_qkv, w_o, b_o = [], [], [], []
    g1, be1, w1, b1, w2, b2, g2, be2 = ([] for _ in range(8))
    for p in layer_params:
        w_qkv.append(jnp.concatenate([p["wq"] * scale, p["wk"], p["wv"]], axis=1))   # (D, 3D)
        b_qkv.append(jnp.concatenate([p["bq"] * scale, p["bk"], p["bv"]]).reshape(1, 3 * D))
        w_o.append(p["wo"])                                   # (D, D)
        b_o.append(p["bo"].reshape(1, D))
        g1.append(p["g1"].reshape(1, D)); be1.append(p["be1"].reshape(1, D))
        w1.append(p["w1"]); b1.append(p["b1"].reshape(1, F))
        w2.append(p["w2"]); b2.append(p["b2"].reshape(1, D))
        g2.append(p["g2"].reshape(1, D)); be2.append(p["be2"].reshape(1, D))

    return {
        "w_qkv": jnp.stack(w_qkv).astype(compute_dtype),   # (L, D, 3D)
        "b_qkv": jnp.stack(b_qkv).astype(jnp.float32),     # (L, 1, 3D)
        "w_o":   jnp.stack(w_o).astype(compute_dtype),     # (L, D, D)
        "b_o":   jnp.stack(b_o).astype(jnp.float32),       # (L, 1, D)
        "ln1_g": jnp.stack(g1).astype(jnp.float32),
        "ln1_b": jnp.stack(be1).astype(jnp.float32),
        "w1":    jnp.stack(w1).astype(compute_dtype),      # (L, D, F)
        "b1":    jnp.stack(b1).astype(jnp.float32),        # (L, 1, F)
        "w2":    jnp.stack(w2).astype(compute_dtype),      # (L, F, D)
        "b2":    jnp.stack(b2).astype(jnp.float32),        # (L, 1, D)
        "ln2_g": jnp.stack(g2).astype(jnp.float32),
        "ln2_b": jnp.stack(be2).astype(jnp.float32),
        "final_g": final_params["gamma"].reshape(1, D).astype(jnp.float32),
        "final_b": final_params["beta"].reshape(1, D).astype(jnp.float32),
    }


# ---------------- pure-JAX f32 reference for sanity checking ----------------
def _ref_layer_norm(x, gamma, beta):
    mean = jnp.mean(x, axis=-1, keepdims=True)
    var = jnp.mean((x - mean) ** 2, axis=-1, keepdims=True)
    return (x - mean) * jax.lax.rsqrt(var + LN_EPS) * gamma + beta


def _ref_layer(x, p, num_heads):
    D = x.shape[-1]
    dh = D // num_heads
    q = x @ p["wq"] + p["bq"]
    k = x @ p["wk"] + p["bk"]
    v = x @ p["wv"] + p["bv"]
    outs = []
    for h in range(num_heads):
        qh, kh, vh = (t[..., h * dh:(h + 1) * dh] for t in (q, k, v))
        s = jnp.einsum("bsd,btd->bst", qh, kh) / jnp.sqrt(jnp.float32(dh))
        pr = jax.nn.softmax(s, axis=-1)
        outs.append(jnp.einsum("bst,btd->bsd", pr, vh))
    attn = jnp.concatenate(outs, axis=-1) @ p["wo"] + p["bo"]
    x = _ref_layer_norm(x + attn, p["g1"], p["be1"])
    ff = jnp.maximum(x @ p["w1"] + p["b1"], 0.0) @ p["w2"] + p["b2"]
    return _ref_layer_norm(x + ff, p["g2"], p["be2"])


def _ref_forward(x, layer_params, final_params, num_heads):
    for p in layer_params:
        x = _ref_layer(x, p, num_heads)
    return _ref_layer_norm(x, final_params["gamma"], final_params["beta"])


if __name__ == "__main__":
    num_layers = 2
    num_heads = 4
    embed_dims = 32
    ffn_dims = 4 * embed_dims
    batch, seq = 2, 8

    key = jax.random.PRNGKey(0)
    key, xkey = jax.random.split(key)
    x = jax.random.normal(xkey, (batch, seq, embed_dims), dtype=jnp.float32)

    layer_params, final_params = init_params(key, num_layers, embed_dims, ffn_dims)
    stacked = prepare_params(layer_params, final_params, num_heads,
                             compute_dtype=jnp.bfloat16)

    out = encoder_forward(x, stacked, num_heads)
    out = jax.block_until_ready(out)

    ref = _ref_forward(x, layer_params, final_params, num_heads)
    assert out.shape == (batch, seq, embed_dims)
    assert bool(jnp.all(jnp.isfinite(out)))
    max_err = float(jnp.max(jnp.abs(out - ref)))
    assert bool(jnp.allclose(out, ref, rtol=2e-2, atol=2e-2)), f"max abs err {max_err}"

    print("KERNEL_OK")
</pallas_src>

<mosaic_0001>
module attributes {stable_mosaic.version = 11 : i64} {
  func.func @encoder_stack_kernel(%arg0: i32, %arg1: i32, %arg2: memref<1x16x32xf32, #tpu.memory_space<vmem>>, %arg3: memref<1x32x96xbf16, #tpu.memory_space<vmem>>, %arg4: memref<1x1x96xf32, #tpu.memory_space<vmem>>, %arg5: memref<1x32x32xbf16, #tpu.memory_space<vmem>>, %arg6: memref<1x1x32xf32, #tpu.memory_space<vmem>>, %arg7: memref<1x1x32xf32, #tpu.memory_space<vmem>>, %arg8: memref<1x1x32xf32, #tpu.memory_space<vmem>>, %arg9: memref<1x32x128xbf16, #tpu.memory_space<vmem>>, %arg10: memref<1x1x128xf32, #tpu.memory_space<vmem>>, %arg11: memref<1x128x32xbf16, #tpu.memory_space<vmem>>, %arg12: memref<1x1x32xf32, #tpu.memory_space<vmem>>, %arg13: memref<1x1x32xf32, #tpu.memory_space<vmem>>, %arg14: memref<1x1x32xf32, #tpu.memory_space<vmem>>, %arg15: memref<1x32xf32, #tpu.memory_space<vmem>>, %arg16: memref<1x32xf32, #tpu.memory_space<vmem>>, %arg17: memref<1x16x32xf32, #tpu.memory_space<vmem>>, %arg18: memref<16x32xf32, #tpu.memory_space<vmem>>) attributes {dimension_semantics = [#tpu.dimension_semantics<parallel>, #tpu.dimension_semantics<arbitrary>], iteration_bounds = array<i64: 1, 2>, scalar_prefetch = 0 : i64, scratch_operands = 1 : i64, tpu.core_type = #tpu.core_type<tc>, window_params = [{transform_indices = @transform_0, window_bounds = array<i64: 1, 16, 32>}, {transform_indices = @transform_1, window_bounds = array<i64: 1, 32, 96>}, {transform_indices = @transform_2, window_bounds = array<i64: 1, 1, 96>}, {transform_indices = @transform_3, window_bounds = array<i64: 1, 32, 32>}, {transform_indices = @transform_4, window_bounds = array<i64: 1, 1, 32>}, {transform_indices = @transform_5, window_bounds = array<i64: 1, 1, 32>}, {transform_indices = @transform_6, window_bounds = array<i64: 1, 1, 32>}, {transform_indices = @transform_7, window_bounds = array<i64: 1, 32, 128>}, {transform_indices = @transform_8, window_bounds = array<i64: 1, 1, 128>}, {transform_indices = @transform_9, window_bounds = array<i64: 1, 128, 32>}, {transform_indices = @transform_10, window_bounds = array<i64: 1, 1, 32>}, {transform_indices = @transform_11, window_bounds = array<i64: 1, 1, 32>}, {transform_indices = @transform_12, window_bounds = array<i64: 1, 1, 32>}, {pipeline_mode = #tpu.pipeline_mode<synchronous>, transform_indices = @transform_13, window_bounds = array<i64: 1, 32>}, {pipeline_mode = #tpu.pipeline_mode<synchronous>, transform_indices = @transform_14, window_bounds = array<i64: 1, 32>}, {transform_indices = @transform_15, window_bounds = array<i64: 1, 16, 32>}]} {
    %c0_i32 = arith.constant 0 : i32
    %0 = arith.cmpi eq, %arg1, %c0_i32 : i32
    %1 = arith.extui %0 : i1 to i32
    %c0_i32_0 = arith.constant 0 : i32
    %2 = arith.cmpi ne, %1, %c0_i32_0 : i32
    scf.if %2 {
      %c0_59 = arith.constant 0 : index
      %c0_60 = arith.constant 0 : index
      %c0_61 = arith.constant 0 : index
      %148 = vector.load %arg2[%c0_59, %c0_60, %c0_61] : memref<1x16x32xf32, #tpu.memory_space<vmem>>, vector<1x16x32xf32>
      %149 = vector.shape_cast %148 : vector<1x16x32xf32> to vector<16x32xf32>
      %c0_62 = arith.constant 0 : index
      %c0_63 = arith.constant 0 : index
      %150 = vector.load %arg18[%c0_62, %c0_63] : memref<16x32xf32, #tpu.memory_space<vmem>>, vector<16x32xf32>
      tpu.vector_store %arg18[%c0_62, %c0_63], %149 {strides = array<i32>} : memref<16x32xf32, #tpu.memory_space<vmem>>, vector<16x32xf32>,
    } else {
    }
    %c0 = arith.constant 0 : index
    %c0_1 = arith.constant 0 : index
    %3 = vector.load %arg18[%c0, %c0_1] : memref<16x32xf32, #tpu.memory_space<vmem>>, vector<16x32xf32>
    %4 = arith.truncf %3 : vector<16x32xf32> to vector<16x32xbf16>
    %c0_2 = arith.constant 0 : index
    %c0_3 = arith.constant 0 : index
    %c0_4 = arith.constant 0 : index
    %5 = vector.load %arg3[%c0_2, %c0_3, %c0_4] : memref<1x32x96xbf16, #tpu.memory_space<vmem>>, vector<1x32x96xbf16>
    %6 = vector.shape_cast %5 : vector<1x32x96xbf16> to vector<32x96xbf16>
    %cst = arith.constant dense<0.000000e+00> : vector<16x96xf32>
    %7 = tpu.matmul %4, %6, %cst {dimension_numbers = #tpu.dot_dimension_numbers<[1], [0], [0], [1], [0, 0, 1, 1], [], []>} : vector<16x32xbf16>, vector<32x96xbf16>, vector<16x96xf32> -> vector<16x96xf32>
    %c0_5 = arith.constant 0 : index
    %c0_6 = arith.constant 0 : index
    %c0_7 = arith.constant 0 : index
    %8 = vector.load %arg4[%c0_5, %c0_6, %c0_7] : memref<1x1x96xf32, #tpu.memory_space<vmem>>, vector<1x1x96xf32>
    %9 = vector.shape_cast %8 : vector<1x1x96xf32> to vector<1x96xf32>
    %10 = vector.broadcast %9 : vector<1x96xf32> to vector<16x96xf32>
    %11 = arith.addf %7, %10 : vector<16x96xf32>
    %12 = arith.truncf %11 : vector<16x96xf32> to vector<16x96xbf16>
    %13 = vector.shape_cast %12 : vector<16x96xbf16> to vector<2x8x96xbf16>
    %14 = vector.extract_strided_slice %13 {offsets = [0, 0, 0], sizes = [2, 8, 8], strides = [1, 1, 1]} : vector<2x8x96xbf16> to vector<2x8x8xbf16>
    %15 = vector.extract_strided_slice %13 {offsets = [0, 0, 8], sizes = [2, 8, 8], strides = [1, 1, 1]} : vector<2x8x96xbf16> to vector<2x8x8xbf16>
    %16 = vector.extract_strided_slice %13 {offsets = [0, 0, 16], sizes = [2, 8, 8], strides = [1, 1, 1]} : vector<2x8x96xbf16> to vector<2x8x8xbf16>
    %17 = vector.extract_strided_slice %13 {offsets = [0, 0, 24], sizes = [2, 8, 8], strides = [1, 1, 1]} : vector<2x8x96xbf16> to vector<2x8x8xbf16>
    %18 = vector.shape_cast %14 : vector<2x8x8xbf16> to vector<1x2x8x8xbf16>
    %19 = vector.shape_cast %15 : vector<2x8x8xbf16> to vector<1x2x8x8xbf16>
    %20 = vector.shape_cast %16 : vector<2x8x8xbf16> to vector<1x2x8x8xbf16>
    %21 = vector.shape_cast %17 : vector<2x8x8xbf16> to vector<1x2x8x8xbf16>
    %22 = tpu.concatenate %18, %19, %20, %21 in 0 : vector<1x2x8x8xbf16>, vector<1x2x8x8xbf16>, vector<1x2x8x8xbf16>, vector<1x2x8x8xbf16> -> vector<4x2x8x8xbf16>
    %23 = vector.shape_cast %22 : vector<4x2x8x8xbf16> to vector<8x8x8xbf16>
    %24 = vector.extract_strided_slice %13 {offsets = [0, 0, 32], sizes = [2, 8, 8], strides = [1, 1, 1]} : vector<2x8x96xbf16> to vector<2x8x8xbf16>
    %25 = vector.extract_strided_slice %13 {offsets = [0, 0, 40], sizes = [2, 8, 8], strides = [1, 1, 1]} : vector<2x8x96xbf16> to vector<2x8x8xbf16>
    %26 = vector.extract_strided_slice %13 {offsets = [0, 0, 48], sizes = [2, 8, 8], strides = [1, 1, 1]} : vector<2x8x96xbf16> to vector<2x8x8xbf16>
    %27 = vector.extract_strided_slice %13 {offsets = [0, 0, 56], sizes = [2, 8, 8], strides = [1, 1, 1]} : vector<2x8x96xbf16> to vector<2x8x8xbf16>
    %28 = vector.shape_cast %24 : vector<2x8x8xbf16> to vector<1x2x8x8xbf16>
    %29 = vector.shape_cast %25 : vector<2x8x8xbf16> to vector<1x2x8x8xbf16>
    %30 = vector.shape_cast %26 : vector<2x8x8xbf16> to vector<1x2x8x8xbf16>
    %31 = vector.shape_cast %27 : vector<2x8x8xbf16> to vector<1x2x8x8xbf16>
    %32 = tpu.concatenate %28, %29, %30, %31 in 0 : vector<1x2x8x8xbf16>, vector<1x2x8x8xbf16>, vector<1x2x8x8xbf16>, vector<1x2x8x8xbf16> -> vector<4x2x8x8xbf16>
    %33 = vector.shape_cast %32 : vector<4x2x8x8xbf16> to vector<8x8x8xbf16>
    %34 = vector.extract_strided_slice %13 {offsets = [0, 0, 64], sizes = [2, 8, 8], strides = [1, 1, 1]} : vector<2x8x96xbf16> to vector<2x8x8xbf16>
    %35 = vector.extract_strided_slice %13 {offsets = [0, 0, 72], sizes = [2, 8, 8], strides = [1, 1, 1]} : vector<2x8x96xbf16> to vector<2x8x8xbf16>
    %36 = vector.extract_strided_slice %13 {offsets = [0, 0, 80], sizes = [2, 8, 8], strides = [1, 1, 1]} : vector<2x8x96xbf16> to vector<2x8x8xbf16>
    %37 = vector.extract_strided_slice %13 {offsets = [0, 0, 88], sizes = [2, 8, 8], strides = [1, 1, 1]} : vector<2x8x96xbf16> to vector<2x8x8xbf16>
    %38 = vector.shape_cast %34 : vector<2x8x8xbf16> to vector<1x2x8x8xbf16>
    %39 = vector.shape_cast %35 : vector<2x8x8xbf16> to vector<1x2x8x8xbf16>
    %40 = vector.shape_cast %36 : vector<2x8x8xbf16> to vector<1x2x8x8xbf16>
    %41 = vector.shape_cast %37 : vector<2x8x8xbf16> to vector<1x2x8x8xbf16>
    %42 = tpu.concatenate %38, %39, %40, %41 in 0 : vector<1x2x8x8xbf16>, vector<1x2x8x8xbf16>, vector<1x2x8x8xbf16>, vector<1x2x8x8xbf16> -> vector<4x2x8x8xbf16>
    %43 = vector.shape_cast %42 : vector<4x2x8x8xbf16> to vector<8x8x8xbf16>
    "tpu.trace_start"() <{level = 10 : i32, message = "bqd,bkd->bqk"}> : () -> ()
    %cst_8 = arith.constant dense<0.000000e+00> : vector<8x8x8xf32>
    %44 = tpu.matmul %23, %33, %cst_8 {dimension_numbers = #tpu.dot_dimension_numbers<[2], [2], [1], [1], [0, 0, 0, 1, 1, 1], [0], [0]>} : vector<8x8x8xbf16>, vector<8x8x8xbf16>, vector<8x8x8xf32> -> vector<8x8x8xf32>
    "tpu.trace_stop"() : () -> ()
    %cst_9 = arith.constant dense<0xFF800000> : vector<8x8xf32>
    %45 = vector.multi_reduction <maximumf>, %44, %cst_9 [2] : vector<8x8x8xf32> to vector<8x8xf32>
    %46 = vector.shape_cast %45 : vector<8x8xf32> to vector<8x8x1xf32>
    %47 = vector.broadcast %46 : vector<8x8x1xf32> to vector<8x8x8xf32>
    %48 = arith.subf %44, %47 : vector<8x8x8xf32>
    %49 = math.exp %48 : vector<8x8x8xf32>
    %cst_10 = arith.constant dense<0.000000e+00> : vector<8x8xf32>
    %50 = vector.multi_reduction <add>, %49, %cst_10 [2] : vector<8x8x8xf32> to vector<8x8xf32>
    %51 = vector.shape_cast %50 : vector<8x8xf32> to vector<8x8x1xf32>
    %52 = tpu.reciprocal %51 {approx = true} : vector<8x8x1xf32> -> vector<8x8x1xf32>
    %53 = vector.broadcast %52 : vector<8x8x1xf32> to vector<8x8x8xf32>
    %54 = arith.mulf %49, %53 : vector<8x8x8xf32>
    %55 = arith.truncf %54 : vector<8x8x8xf32> to vector<8x8x8xbf16>
    "tpu.trace_start"() <{level = 10 : i32, message = "bqk,bkd->bqd"}> : () -> ()
    %cst_11 = arith.constant dense<0.000000e+00> : vector<8x8x8xf32>
    %56 = tpu.matmul %55, %43, %cst_11 {dimension_numbers = #tpu.dot_dimension_numbers<[2], [1], [1], [2], [0, 0, 0, 1, 1, 2], [0], [0]>} : vector<8x8x8xbf16>, vector<8x8x8xbf16>, vector<8x8x8xf32> -> vector<8x8x8xf32>
    "tpu.trace_stop"() : () -> ()
    %57 = vector.shape_cast %56 : vector<8x8x8xf32> to vector<4x2x8x8xf32>
    %58 = vector.extract_strided_slice %57 {offsets = [0, 0, 0, 0], sizes = [1, 2, 8, 8], strides = [1, 1, 1, 1]} : vector<4x2x8x8xf32> to vector<1x2x8x8xf32>
    %59 = vector.shape_cast %58 : vector<1x2x8x8xf32> to vector<2x8x8xf32>
    %60 = vector.extract_strided_slice %57 {offsets = [1, 0, 0, 0], sizes = [1, 2, 8, 8], strides = [1, 1, 1, 1]} : vector<4x2x8x8xf32> to vector<1x2x8x8xf32>
    %61 = vector.shape_cast %60 : vector<1x2x8x8xf32> to vector<2x8x8xf32>
    %62 = vector.extract_strided_slice %57 {offsets = [2, 0, 0, 0], sizes = [1, 2, 8, 8], strides = [1, 1, 1, 1]} : vector<4x2x8x8xf32> to vector<1x2x8x8xf32>
    %63 = vector.shape_cast %62 : vector<1x2x8x8xf32> to vector<2x8x8xf32>
    %64 = vector.extract_strided_slice %57 {offsets = [3, 0, 0, 0], sizes = [1, 2, 8, 8], strides = [1, 1, 1, 1]} : vector<4x2x8x8xf32> to vector<1x2x8x8xf32>
    %65 = vector.shape_cast %64 : vector<1x2x8x8xf32> to vector<2x8x8xf32>
    %66 = tpu.concatenate %59, %61, %63, %65 in 2 : vector<2x8x8xf32>, vector<2x8x8xf32>, vector<2x8x8xf32>, vector<2x8x8xf32> -> vector<2x8x32xf32>
    %67 = vector.shape_cast %66 : vector<2x8x32xf32> to vector<16x32xf32>
    %68 = arith.truncf %67 : vector<16x32xf32> to vector<16x32xbf16>
    %c0_12 = arith.constant 0 : index
    %c0_13 = arith.constant 0 : index
    %c0_14 = arith.constant 0 : index
    %69 = vector.load %arg5[%c0_12, %c0_13, %c0_14] : memref<1x32x32xbf16, #tpu.memory_space<vmem>>, vector<1x32x32xbf16>
    %70 = vector.shape_cast %69 : vector<1x32x32xbf16> to vector<32x32xbf16>
    %cst_15 = arith.constant dense<0.000000e+00> : vector<16x32xf32>
    %71 = tpu.matmul %68, %70, %cst_15 {dimension_numbers = #tpu.dot_dimension_numbers<[1], [0], [0], [1], [0, 0, 1, 1], [], []>} : vector<16x32xbf16>, vector<32x32xbf16>, vector<16x32xf32> -> vector<16x32xf32>
    %c0_16 = arith.constant 0 : index
    %c0_17 = arith.constant 0 : index
    %c0_18 = arith.constant 0 : index
    %72 = vector.load %arg6[%c0_16, %c0_17, %c0_18] : memref<1x1x32xf32, #tpu.memory_space<vmem>>, vector<1x1x32xf32>
    %73 = vector.shape_cast %72 : vector<1x1x32xf32> to vector<1x32xf32>
    %74 = vector.broadcast %73 : vector<1x32xf32> to vector<16x32xf32>
    %75 = arith.addf %71, %74 : vector<16x32xf32>
    %76 = arith.addf %3, %75 : vector<16x32xf32>
    %c0_19 = arith.constant 0 : index
    %c0_20 = arith.constant 0 : index
    %c0_21 = arith.constant 0 : index
    %77 = vector.load %arg7[%c0_19, %c0_20, %c0_21] : memref<1x1x32xf32, #tpu.memory_space<vmem>>, vector<1x1x32xf32>
    %78 = vector.shape_cast %77 : vector<1x1x32xf32> to vector<1x32xf32>
    %c0_22 = arith.constant 0 : index
    %c0_23 = arith.constant 0 : index
    %c0_24 = arith.constant 0 : index
    %79 = vector.load %arg8[%c0_22, %c0_23, %c0_24] : memref<1x1x32xf32, #tpu.memory_space<vmem>>, vector<1x1x32xf32>
    %80 = vector.shape_cast %79 : vector<1x1x32xf32> to vector<1x32xf32>
    %cst_25 = arith.constant dense<0.000000e+00> : vector<16xf32>
    %81 = vector.multi_reduction <add>, %76, %cst_25 [1] : vector<16x32xf32> to vector<16xf32>
    %82 = vector.shape_cast %81 : vector<16xf32> to vector<16x1xf32>
    %cst_26 = arith.constant 3.200000e+01 : f32
    %83 = vector.broadcast %cst_26 : f32 to vector<16x1xf32>
    %84 = arith.divf %82, %83 : vector<16x1xf32>
    %85 = vector.broadcast %84 : vector<16x1xf32> to vector<16x32xf32>
    %86 = arith.subf %76, %85 : vector<16x32xf32>
    %87 = arith.mulf %86, %86 : vector<16x32xf32>
    %cst_27 = arith.constant dense<0.000000e+00> : vector<16xf32>
    %88 = vector.multi_reduction <add>, %87, %cst_27 [1] : vector<16x32xf32> to vector<16xf32>
    %89 = vector.shape_cast %88 : vector<16xf32> to vector<16x1xf32>
    %cst_28 = arith.constant 3.200000e+01 : f32
    %90 = vector.broadcast %cst_28 : f32 to vector<16x1xf32>
    %91 = arith.divf %89, %90 : vector<16x1xf32>
    %cst_29 = arith.constant 9.99999974E-6 : f32
    %92 = vector.broadcast %cst_29 : f32 to vector<16x1xf32>
    %93 = arith.addf %91, %92 : vector<16x1xf32>
    %94 = math.rsqrt %93 : vector<16x1xf32>
    %95 = vector.broadcast %94 : vector<16x1xf32> to vector<16x32xf32>
    %96 = arith.mulf %86, %95 : vector<16x32xf32>
    %97 = vector.broadcast %78 : vector<1x32xf32> to vector<16x32xf32>
    %98 = arith.mulf %96, %97 : vector<16x32xf32>
    %99 = vector.broadcast %80 : vector<1x32xf32> to vector<16x32xf32>
    %100 = arith.addf %98, %99 : vector<16x32xf32>
    %101 = arith.truncf %100 : vector<16x32xf32> to vector<16x32xbf16>
    %c0_30 = arith.constant 0 : index
    %c0_31 = arith.constant 0 : index
    %c0_32 = arith.constant 0 : index
    %102 = vector.load %arg9[%c0_30, %c0_31, %c0_32] : memref<1x32x128xbf16, #tpu.memory_space<vmem>>, vector<1x32x128xbf16>
    %103 = vector.shape_cast %102 : vector<1x32x128xbf16> to vector<32x128xbf16>
    %cst_33 = arith.constant dense<0.000000e+00> : vector<16x128xf32>
    %104 = tpu.matmul %101, %103, %cst_33 {dimension_numbers = #tpu.dot_dimension_numbers<[1], [0], [0], [1], [0, 0, 1, 1], [], []>} : vector<16x32xbf16>, vector<32x128xbf16>, vector<16x128xf32> -> vector<16x128xf32>
    %c0_34 = arith.constant 0 : index
    %c0_35 = arith.constant 0 : index
    %c0_36 = arith.constant 0 : index
    %105 = vector.load %arg10[%c0_34, %c0_35, %c0_36] : memref<1x1x128xf32, #tpu.memory_space<vmem>>, vector<1x1x128xf32>
    %106 = vector.shape_cast %105 : vector<1x1x128xf32> to vector<1x128xf32>
    %107 = vector.broadcast %106 : vector<1x128xf32> to vector<16x128xf32>
    %108 = arith.addf %104, %107 : vector<16x128xf32>
    %cst_37 = arith.constant 0.000000e+00 : f32
    %109 = vector.broadcast %cst_37 : f32 to vector<16x128xf32>
    %110 = arith.maximumf %108, %109 : vector<16x128xf32>
    %111 = arith.truncf %110 : vector<16x128xf32> to vector<16x128xbf16>
    %c0_38 = arith.constant 0 : index
    %c0_39 = arith.constant 0 : index
    %c0_40 = arith.constant 0 : index
    %112 = vector.load %arg11[%c0_38, %c0_39, %c0_40] : memref<1x128x32xbf16, #tpu.memory_space<vmem>>, vector<1x128x32xbf16>
    %113 = vector.shape_cast %112 : vector<1x128x32xbf16> to vector<128x32xbf16>
    %cst_41 = arith.constant dense<0.000000e+00> : vector<16x32xf32>
    %114 = tpu.matmul %111, %113, %cst_41 {dimension_numbers = #tpu.dot_dimension_numbers<[1], [0], [0], [1], [0, 0, 1, 1], [], []>} : vector<16x128xbf16>, vector<128x32xbf16>, vector<16x32xf32> -> vector<16x32xf32>
    %c0_42 = arith.constant 0 : index
    %c0_43 = arith.constant 0 : index
    %c0_44 = arith.constant 0 : index
    %115 = vector.load %arg12[%c0_42, %c0_43, %c0_44] : memref<1x1x32xf32, #tpu.memory_space<vmem>>, vector<1x1x32xf32>
    %116 = vector.shape_cast %115 : vector<1x1x32xf32> to vector<1x32xf32>
    %117 = vector.broadcast %116 : vector<1x32xf32> to vector<16x32xf32>
    %118 = arith.addf %114, %117 : vector<16x32xf32>
    %119 = arith.addf %100, %118 : vector<16x32xf32>
    %c0_45 = arith.constant 0 : index
    %c0_46 = arith.constant 0 : index
    %c0_47 = arith.constant 0 : index
    %120 = vector.load %arg13[%c0_45, %c0_46, %c0_47] : memref<1x1x32xf32, #tpu.memory_space<vmem>>, vector<1x1x32xf32>
    %121 = vector.shape_cast %120 : vector<1x1x32xf32> to vector<1x32xf32>
    %c0_48 = arith.constant 0 : index
    %c0_49 = arith.constant 0 : index
    %c0_50 = arith.constant 0 : index
    %122 = vector.load %arg14[%c0_48, %c0_49, %c0_50] : memref<1x1x32xf32, #tpu.memory_space<vmem>>, vector<1x1x32xf32>
    %123 = vector.shape_cast %122 : vector<1x1x32xf32> to vector<1x32xf32>
    %cst_51 = arith.constant dense<0.000000e+00> : vector<16xf32>
    %124 = vector.multi_reduction <add>, %119, %cst_51 [1] : vector<16x32xf32> to vector<16xf32>
    %125 = vector.shape_cast %124 : vector<16xf32> to vector<16x1xf32>
    %cst_52 = arith.constant 3.200000e+01 : f32
    %126 = vector.broadcast %cst_52 : f32 to vector<16x1xf32>
    %127 = arith.divf %125, %126 : vector<16x1xf32>
    %128 = vector.broadcast %127 : vector<16x1xf32> to vector<16x32xf32>
    %129 = arith.subf %119, %128 : vector<16x32xf32>
    %130 = arith.mulf %129, %129 : vector<16x32xf32>
    %cst_53 = arith.constant dense<0.000000e+00> : vector<16xf32>
    %131 = vector.multi_reduction <add>, %130, %cst_53 [1] : vector<16x32xf32> to vector<16xf32>
    %132 = vector.shape_cast %131 : vector<16xf32> to vector<16x1xf32>
    %cst_54 = arith.constant 3.200000e+01 : f32
    %133 = vector.broadcast %cst_54 : f32 to vector<16x1xf32>
    %134 = arith.divf %132, %133 : vector<16x1xf32>
    %cst_55 = arith.constant 9.99999974E-6 : f32
    %135 = vector.broadcast %cst_55 : f32 to vector<16x1xf32>
    %136 = arith.addf %134, %135 : vector<16x1xf32>
    %137 = math.rsqrt %136 : vector<16x1xf32>
    %138 = vector.broadcast %137 : vector<16x1xf32> to vector<16x32xf32>
    %139 = arith.mulf %129, %138 : vector<16x32xf32>
    %140 = vector.broadcast %121 : vector<1x32xf32> to vector<16x32xf32>
    %141 = arith.mulf %139, %140 : vector<16x32xf32>
    %142 = vector.broadcast %123 : vector<1x32xf32> to vector<16x32xf32>
    %143 = arith.addf %141, %142 : vector<16x32xf32>
    %c0_56 = arith.constant 0 : index
    %c0_57 = arith.constant 0 : index
    %144 = vector.load %arg18[%c0_56, %c0_57] : memref<16x32xf32, #tpu.memory_space<vmem>>, vector<16x32xf32>
    tpu.vector_store %arg18[%c0_56, %c0_57], %143 {strides = array<i32>} : memref<16x32xf32, #tpu.memory_space<vmem>>, vector<16x32xf32>,
    %c1_i32 = arith.constant 1 : i32
    %145 = arith.cmpi eq, %arg1, %c1_i32 : i32
    %146 = arith.extui %145 : i1 to i32
    %c0_i32_58 = arith.constant 0 : i32
    %147 = arith.cmpi ne, %146, %c0_i32_58 : i32
    scf.if %147 {
      %c0_59 = arith.constant 0 : index
      %c0_60 = arith.constant 0 : index
      %148 = vector.load %arg15[%c0_59, %c0_60] : memref<1x32xf32, #tpu.memory_space<vmem>>, vector<1x32xf32>
      %c0_61 = arith.constant 0 : index
      %c0_62 = arith.constant 0 : index
      %149 = vector.load %arg16[%c0_61, %c0_62] : memref<1x32xf32, #tpu.memory_space<vmem>>, vector<1x32xf32>
      %cst_63 = arith.constant dense<0.000000e+00> : vector<16xf32>
      %150 = vector.multi_reduction <add>, %143, %cst_63 [1] : vector<16x32xf32> to vector<16xf32>
      %151 = vector.shape_cast %150 : vector<16xf32> to vector<16x1xf32>
      %cst_64 = arith.constant 3.200000e+01 : f32
      %152 = vector.broadcast %cst_64 : f32 to vector<16x1xf32>
      %153 = arith.divf %151, %152 : vector<16x1xf32>
      %154 = vector.broadcast %153 : vector<16x1xf32> to vector<16x32xf32>
      %155 = arith.subf %143, %154 : vector<16x32xf32>
      %156 = arith.mulf %155, %155 : vector<16x32xf32>
      %cst_65 = arith.constant dense<0.000000e+00> : vector<16xf32>
      %157 = vector.multi_reduction <add>, %156, %cst_65 [1] : vector<16x32xf32> to vector<16xf32>
      %158 = vector.shape_cast %157 : vector<16xf32> to vector<16x1xf32>
      %cst_66 = arith.constant 3.200000e+01 : f32
      %159 = vector.broadcast %cst_66 : f32 to vector<16x1xf32>
      %160 = arith.divf %158, %159 : vector<16x1xf32>
      %cst_67 = arith.constant 9.99999974E-6 : f32
      %161 = vector.broadcast %cst_67 : f32 to vector<16x1xf32>
      %162 = arith.addf %160, %161 : vector<16x1xf32>
      %163 = math.rsqrt %162 : vector<16x1xf32>
      %164 = vector.broadcast %163 : vector<16x1xf32> to vector<16x32xf32>
      %165 = arith.mulf %155, %164 : vector<16x32xf32>
      %166 = vector.broadcast %148 : vector<1x32xf32> to vector<16x32xf32>
      %167 = arith.mulf %165, %166 : vector<16x32xf32>
      %168 = vector.broadcast %149 : vector<1x32xf32> to vector<16x32xf32>
      %169 = arith.addf %167, %168 : vector<16x32xf32>
      %c0_68 = arith.constant 0 : index
      %c0_69 = arith.constant 0 : index
      %c0_70 = arith.constant 0 : index
      %170 = vector.load %arg17[%c0_68, %c0_69, %c0_70] : memref<1x16x32xf32, #tpu.memory_space<vmem>>, vector<1x16x32xf32>
      %171 = vector.shape_cast %170 : vector<1x16x32xf32> to vector<16x32xf32>
      %172 = vector.shape_cast %169 : vector<16x32xf32> to vector<1x16x32xf32>
      tpu.vector_store %arg17[%c0_68, %c0_69, %c0_70], %172 {strides = array<i32>} : memref<1x16x32xf32, #tpu.memory_space<vmem>>, vector<1x16x32xf32>,
    } else {
    }
    return
  }
  func.func @transform_0(%arg0: i32, %arg1: i32) -> (i32, i32, i32) {
    %c0_i32 = arith.constant 0 : i32
    %c0_i32_0 = arith.constant 0 : i32
    %c0_i32_1 = arith.constant 0 : i32
    return %arg0, %c0_i32, %c0_i32_0 : i32, i32, i32
  }
  func.func @transform_1(%arg0: i32, %arg1: i32) -> (i32, i32, i32) {
    %c0_i32 = arith.constant 0 : i32
    %c0_i32_0 = arith.constant 0 : i32
    %c0_i32_1 = arith.constant 0 : i32
    return %arg1, %c0_i32, %c0_i32_0 : i32, i32, i32
  }
  func.func @transform_2(%arg0: i32, %arg1: i32) -> (i32, i32, i32) {
    %c0_i32 = arith.constant 0 : i32
    %c0_i32_0 = arith.constant 0 : i32
    %c0_i32_1 = arith.constant 0 : i32
    return %arg1, %c0_i32, %c0_i32_0 : i32, i32, i32
  }
  func.func @transform_3(%arg0: i32, %arg1: i32) -> (i32, i32, i32) {
    %c0_i32 = arith.constant 0 : i32
    %c0_i32_0 = arith.constant 0 : i32
    %c0_i32_1 = arith.constant 0 : i32
    return %arg1, %c0_i32, %c0_i32_0 : i32, i32, i32
  }
  func.func @transform_4(%arg0: i32, %arg1: i32) -> (i32, i32, i32) {
    %c0_i32 = arith.constant 0 : i32
    %c0_i32_0 = arith.constant 0 : i32
    %c0_i32_1 = arith.constant 0 : i32
    return %arg1, %c0_i32, %c0_i32_0 : i32, i32, i32
  }
  func.func @transform_5(%arg0: i32, %arg1: i32) -> (i32, i32, i32) {
    %c0_i32 = arith.constant 0 : i32
    %c0_i32_0 = arith.constant 0 : i32
    %c0_i32_1 = arith.constant 0 : i32
    return %arg1, %c0_i32, %c0_i32_0 : i32, i32, i32
  }
  func.func @transform_6(%arg0: i32, %arg1: i32) -> (i32, i32, i32) {
    %c0_i32 = arith.constant 0 : i32
    %c0_i32_0 = arith.constant 0 : i32
    %c0_i32_1 = arith.constant 0 : i32
    return %arg1, %c0_i32, %c0_i32_0 : i32, i32, i32
  }
  func.func @transform_7(%arg0: i32, %arg1: i32) -> (i32, i32, i32) {
    %c0_i32 = arith.constant 0 : i32
    %c0_i32_0 = arith.constant 0 : i32
    %c0_i32_1 = arith.constant 0 : i32
    return %arg1, %c0_i32, %c0_i32_0 : i32, i32, i32
  }
  func.func @transform_8(%arg0: i32, %arg1: i32) -> (i32, i32, i32) {
    %c0_i32 = arith.constant 0 : i32
    %c0_i32_0 = arith.constant 0 : i32
    %c0_i32_1 = arith.constant 0 : i32
    return %arg1, %c0_i32, %c0_i32_0 : i32, i32, i32
  }
  func.func @transform_9(%arg0: i32, %arg1: i32) -> (i32, i32, i32) {
    %c0_i32 = arith.constant 0 : i32
    %c0_i32_0 = arith.constant 0 : i32
    %c0_i32_1 = arith.constant 0 : i32
    return %arg1, %c0_i32, %c0_i32_0 : i32, i32, i32
  }
  func.func @transform_10(%arg0: i32, %arg1: i32) -> (i32, i32, i32) {
    %c0_i32 = arith.constant 0 : i32
    %c0_i32_0 = arith.constant 0 : i32
    %c0_i32_1 = arith.constant 0 : i32
    return %arg1, %c0_i32, %c0_i32_0 : i32, i32, i32
  }
  func.func @transform_11(%arg0: i32, %arg1: i32) -> (i32, i32, i32) {
    %c0_i32 = arith.constant 0 : i32
    %c0_i32_0 = arith.constant 0 : i32
    %c0_i32_1 = arith.constant 0 : i32
    return %arg1, %c0_i32, %c0_i32_0 : i32, i32, i32
  }
  func.func @transform_12(%arg0: i32, %arg1: i32) -> (i32, i32, i32) {
    %c0_i32 = arith.constant 0 : i32
    %c0_i32_0 = arith.constant 0 : i32
    %c0_i32_1 = arith.constant 0 : i32
    return %arg1, %c0_i32, %c0_i32_0 : i32, i32, i32
  }
  func.func @transform_13(%arg0: i32, %arg1: i32) -> (i32, i32) {
    %c0_i32 = arith.constant 0 : i32
    %c0_i32_0 = arith.constant 0 : i32
    %c0_i32_1 = arith.constant 0 : i32
    return %c0_i32, %c0_i32_0 : i32, i32
  }
  func.func @transform_14(%arg0: i32, %arg1: i32) -> (i32, i32) {
    %c0_i32 = arith.constant 0 : i32
    %c0_i32_0 = arith.constant 0 : i32
    %c0_i32_1 = arith.constant 0 : i32
    return %c0_i32, %c0_i32_0 : i32, i32
  }
  func.func @transform_15(%arg0: i32, %arg1: i32) -> (i32, i32, i32) {
    %c0_i32 = arith.constant 0 : i32
    %c0_i32_0 = arith.constant 0 : i32
    %c0_i32_1 = arith.constant 0 : i32
    return %arg0, %c0_i32, %c0_i32_0 : i32, i32, i32
  }
}

</mosaic_0001>

<bundles_post_ra>
// kernel: tpu_custom_call.1
= control target key start
LH: loop header
LB: loop body
LE: loop exit
PB: predicated region body
PF: predicated region fallthrough
CT: control target
= control target key end

     0   :  { %s3208_s0 = inlined_call_operand.vmem [shape: f32[1,16,32], index: 0, kind: input, shape index: {}]   ;;  %s3209_s1 = inlined_call_operand.vmem [shape: bf16[2,32,96], index: 1, kind: input, shape index: {}]   ;;  %s3210_s2 = inlined_call_operand.vmem [shape: f32[2,1,96], index: 2, kind: input, shape index: {}]   ;;  %s3211_s3 = inlined_call_operand.vmem [shape: bf16[2,32,32], index: 3, kind: input, shape index: {}]   ;;  %s3212_s4 = inlined_call_operand.vmem [shape: f32[2,1,32], index: 4, kind: input, shape index: {}]   ;;  %s3213_s5 = inlined_call_operand.vmem [shape: f32[2,1,32], index: 5, kind: input, shape index: {}]   ;;  %s3214_s6 = inlined_call_operand.vmem [shape: f32[2,1,32], index: 6, kind: input, shape index: {}]   ;;  %s3215_s7 = inlined_call_operand.vmem [shape: bf16[2,32,128], index: 7, kind: input, shape index: {}]   ;;  %s3216_s8 = inlined_call_operand.vmem [shape: f32[2,1,128], index: 8, kind: input, shape index: {}]   ;;  %s3217_s9 = inlined_call_operand.vmem [shape: bf16[2,128,32], index: 9, kind: input, shape index: {}]   ;;  %s3218_s10 = inlined_call_operand.vmem [shape: f32[2,1,32], index: 10, kind: input, shape index: {}]   ;;  %s3219_s11 = inlined_call_operand.vmem [shape: f32[2,1,32], index: 11, kind: input, shape index: {}]   ;;  %s3220_s12 = inlined_call_operand.vmem [shape: f32[2,1,32], index: 12, kind: input, shape index: {}]   ;;  %s3221_s13 = inlined_call_operand.vmem [shape: f32[1,32], index: 13, kind: input, shape index: {}]   ;;  %s3222_s14 = inlined_call_operand.vmem [shape: f32[1,32], index: 14, kind: input, shape index: {}]   ;;  %s3223_s15 = inlined_call_operand.hbm [shape: f32[1,16,32], index: 15, kind: output, shape index: {}]  }
   0x1   :  { %3228 = sst [smem:[#allocation9_spill]] %s3208_s0 }
   0x2   :  { %3229 = sst [smem:[#allocation10_spill]] %s3209_s1 }
   0x3   :  { %3230 = sst [smem:[#allocation11_spill]] %s3211_s3 }
   0x4   :  { %3231 = sst [smem:[#allocation12_spill]] %s3221_s13 }
   0x5   :  { %3232 = sst [smem:[#allocation13_spill]] %s3222_s14 }
   0x6   :  { %3233 = sst [smem:[#allocation14_spill]] %s3223_s15 }
   0x7   :  { %20 = vsyncpa [#allocation4], 0  ;;  %s2807_s18 = smov 0   ;;  %s2809_s19 = smov 0  }
   0x8   :  { %s2811_s20 = smov 0  }
   0x9 LB: > { %3234 = sst [smem:[#allocation6_spill]] %s2709_s19  ;;  %s35_s22 = sadd.s32 1, %s2709_s19  ;;  %s2713_s20 = sphi %s2811_s20, %s26_s20   ;;  %s2709_s19 = sphi %s2809_s19, %s3254_s19   ;;  %s2705_s18 = sphi %s2807_s18, %s3253_s18  }
   0xa   : > { %3235 = sst [smem:[#allocation7_spill]] %s2713_s20  ;;  %p36_p0 = scmp.ge.s32.totalorder %s35_s22, 2 }
   0xb   : > { %p2284_p1 = scmp.ge.s32.totalorder %s2713_s20, 1  ;;  %p554_p2 = scmp.lt.s32.totalorder %s2713_s20, 3 }
   0xc   : > { %s3256_s22 = smov (%p36_p0, %s35_s22), 0 }
   0xd   : > { %3236 = sst [smem:[#allocation8_spill]] %s3256_s22  ;;  %p555_p3 = pnand %p2284_p1, %p554_p2 }
   0xe   : > { %p646_p4 = scmp.lt.s32.totalorder (!%p555_p3), %s2705_s18, 1  ;;  %s3237_s1 = sld [smem:[#allocation10_spill]] (!%p555_p3) }
   0xf   : > { %558 = sbr.rel (%p555_p3) target bundleno = 3062 (0xbf6), region = 80  ;;  %s3238_s3 = sld [smem:[#allocation11_spill]] (!%p555_p3) }
  0x10   : > { %p2293_p5 = scmp.ne.s32.totalorder (!%p555_p3), %s2705_s18, 0 }
  0x16   : > { %s2830_s23 = scalar_select %p646_p4, %s2705_s18, 1 }
  0x17   : > { %694 = sbr.rel (%p2293_p5) target bundleno = 32 (0x20), region = 84  ;;  %s3239_s19 = sld [smem:[#allocation9_spill]] (!%p2293_p5)  ;;  %vm697_vm0 = vcmask (!%p2293_p5), 261120  }
  0x18   : > { %s2350_s24 = sshll.u32 %s2830_s23, 4  ;;  %s683_s0 = scalar_lea.vmem %s3218_s10, %s2830_s23 }
  0x19   : > { %s650_s30 = scalar_lea.vmem %s3237_s1, %s2350_s24  ;;  %s2843_s21 = scalar_lea.vmem %s3238_s3, %s2350_s24 }
  0x1a   : > { %s2860_s29 = scalar_lea.vmem %s3215_s7, %s2350_s24  ;;  %s2353_s3 = sshll.u32 %s2830_s23, 6 }
  0x1b   : > { %s2870_s15 = scalar_lea.vmem %s3217_s9, %s2353_s3  ;;  %s686_s27 = scalar_lea.vmem %s3219_s11, %s2830_s23 }
  0x1c   : > { %s689_s13 = scalar_lea.vmem %s3220_s12, %s2830_s23 }
  0x1d   : > { %s3240_s22 = smov (!%p2293_p5), %s3239_s19  ;;  %v695_v0 = vld [vmem:[%s3239_s19] sm:$0xff] (!%p2293_p5) }
  0x1e   : > { %v696_v1 = vld [vmem:[%s3240_s22 + $0x8] sm:$0xff]  ;;  %698 = vst.msk [vmem:[#allocation2] sm:$0xff] %vm697_vm0, %v695_v0 }
  0x1f   : > { %699 = vst.msk [vmem:[#allocation2 + $0x8] sm:$0xff] %vm697_vm0, %v696_v1 }
  0x20 PF: > { %v2603_v2 = vld [vmem:[%s650_s30] sm:$0xff]   ;;  %v2715_v3 = vmov 0.0   ;;  %v2604_v4 = vld [vmem:[%s650_s30 + $0x8] sm:$0xff]   ;;  %vm2716_vm1 = vmmov 0   ;;  %vm726_vm2 = vcmask 261120   ;;  %s3241_s26 = scalar_lea.vmem %s3210_s2, %s2830_s23  ;;  %s2717_s14 = smov 112  }
  0x21   : > { %2406 = vmatprep.subr.bf16.mxu0 %v2715_v3  ;;  %2426 = vmatprep.subr.bf16.mxu1 %v2715_v3  ;;  %v2294_v8 = vld [vmem:[%s3241_s26] ss:$0 sm:$0xff]  ;;  %s2718_s20 = smov 120   ;;  %s2719_s25 = smov 104   ;;  %vm791_vm3 = vcmask 64512   ;;  %vm1287_vm4 = vcmask 1043456  }
  0x22   : > { %2407 = vmatpush3.bf16.msra.mxu0 %v2603_v2  ;;  %2410 = vmatprep.mubr.msk.bf16.mxu0 %vm2716_vm1, %v2715_v3  ;;  %s2720_s24 = smov 96   ;;  %s2721_s28 = smov 64   ;;  %vm1693_vm5 = vcmask 130048   ;;  %vm1696_vm6 = vcmask 195584  }
  0x23   : > { %2408 = vmatprep.subr.bf16.mxu0 %v2715_v3  ;;  %2428 = vmatprep.mubr.msk.bf16.mxu1 %vm2716_vm1, %v2715_v3  ;;  %s2722_s16 = smov 8   ;;  %s2723_s17 = smov 16  }
  0x24   : > { %s2724_s19 = smov 24   ;;  %s3242_s1 = scalar_lea.vmem %s3212_s4, %s2830_s23 }
  0x25   : > { %s3243_s26 = scalar_lea.vmem %s3213_s5, %s2830_s23  ;;  %p2343_p6 = scmp.ne.s32.totalorder %s2705_s18, 1 }
  0x26   : > { %v2897_v6 = vld [vmem:[#allocation2 + $0x8] sm:$0xff]  ;;  %2409 = vmatpush3.bf16.msra.mxu0 %v2604_v4  ;;  %s3247_s30 = sld [smem:[#allocation13_spill]] (!%p2343_p6) }
  0x27   : > { %v2895_v5 = vld [vmem:[#allocation2] sm:$0xff]  ;;  %2414 = vmatprep.subr.bf16.mxu0 %v2715_v3 }
  0x28   : > { %v702_v7 = vpack.c.bf16 %v2897_v6, %v2895_v5 }
  0x2a   : > { %2411 = vmatmul.mubr.msk.bf16.vlgmr.msra.gmra.mrb[0].mxu0 %vm726_vm2, %v702_v7 }
  0x2b   : > { %2416 = vmatprep.mubr.msk.bf16.mxu0 %vm2716_vm1, %v2715_v3 }
  0xfd   : > { %v764_v9 = vpop.f32.mrb[0].mxu0 }
  0xfe   : > { %v765_v10 = vadd.f32 %v2294_v8, %v764_v9  ;;  %v2412_v11 = vpop.f32.mrb[1].mxu0 }
  0xff   : > { %v767_v12 = vpop.f32.mrb[2].mxu0 }
 0x100   : > { %v2354_v13 = vpack.c.bf16 %v765_v10, %v765_v10  ;;  %v768_v14 = vadd.f32 %v2294_v8, %v767_v12  ;;  %v2413_v15 = vpop.f32.mrb[3].mxu0 }
 0x102   : > { %781 = vrot.lane.b32.xlu1 %v2354_v13, %s2717_s14  ;;  %777 = vrot.lane.b32.xlu0 %v2354_v13, %s2718_s20  ;;  %v2913_v16 = vpack.c.bf16 %v768_v14, %v768_v14 }
 0x106   : > { %783 = vrot.lane.b32.xlu1 %v2913_v16, %s2717_s14  ;;  %779 = vrot.lane.b32.xlu0 %v2913_v16, %s2718_s20 }
 0x10a   : > { %787 = vrot.lane.b32.xlu1 %v2913_v16, %s2719_s25  ;;  %785 = vrot.lane.b32.xlu0 %v2354_v13, %s2719_s25  ;;  %s3244_s25 = scalar_lea.vmem %s3214_s6, %s2830_s23 }
 0x10e   : > { %838 = vrot.lane.b32.xlu1 %v2913_v16, %s2720_s24  ;;  %789 = vrot.lane.b32.xlu0 %v2354_v13, %s2720_s24 }
 0x174   : > { %v782_v17 = vpop.permute.xlu1 %781  ;;  %v778_v18 = vpop.permute.xlu0 %777 }
 0x175   : > { %v2919_v19 = vcombine.low %v778_v18, %v778_v18  ;;  %v2922_v22 = vcombine.low %v782_v17, %v782_v17 }
 0x177   : > { %888 = vrot.lane.b32.xlu0 %v2919_v19, %s2720_s24 }
 0x178   : > { %v784_v20 = vpop.permute.xlu1 %783  ;;  %v780_v21 = vpop.permute.xlu0 %779 }
 0x179   : > { %v2924_v23 = vcombine.low %v780_v21, %v780_v21  ;;  %v2928_v25 = vcombine.low %v784_v20, %v784_v20 }
 0x17b   : > { %988 = vrot.lane.b32.xlu0 %v2922_v22, %s2720_s24  ;;  %938 = vrot.lane.b32.xlu1 %v2924_v23, %s2720_s24 }
 0x17c   : > { %v786_v24 = vpop.permute.xlu0 %785  ;;  %v788_v27 = vpop.permute.xlu1 %787 }
 0x17d   : > { %v2930_v26 = vcombine.low %v786_v24, %v786_v24  ;;  %v2934_v29 = vcombine.low %v788_v27, %v788_v27 }
 0x17f   : > { %1038 = vrot.lane.b32.xlu1 %v2928_v25, %s2720_s24  ;;  %1088 = vrot.lane.b32.xlu0 %v2930_v26, %s2720_s24 }
 0x180   : > { %v790_v28 = vpop.permute.xlu0 %789  ;;  %v839_v31 = vpop.permute.xlu1 %838 }
 0x181   : > { %v796_v30 = vsel %vm791_vm3, %v790_v28, 0  ;;  %v844_v32 = vsel %vm791_vm3, %v839_v31, 0 }
 0x182   : > { %2415 = vmatpush3.bf16.xpose.msra.mxu0 %v796_v30 }
 0x183   : > { %1138 = vrot.lane.b32.xlu1 %v2934_v29, %s2720_s24  ;;  %2420 = vmatprep.subr.bf16.mxu0 %v2715_v3 }
 0x187   : > { %1282 = vrot.lane.b32.xlu1 %v2354_v13, %s2721_s28 }
 0x189   : > { %2417 = vmatmul.mubr.msk.bf16.vlgmr.msra.gmra.mrb[4].mxu0 %vm791_vm3, %v2354_v13 }
 0x18a   : > { %2421 = vmatpush3.bf16.xpose.msra.mxu0 %v844_v32  ;;  %2422 = vmatprep.mubr.msk.bf16.mxu0 %vm2716_vm1, %v2715_v3 }
 0x18b   : > { %2432 = vmatprep.subr.bf16.mxu0 %v2715_v3 }
 0x191   : > { %2423 = vmatmul.mubr.msk.bf16.vlgmr.msra.gmra.mrb[8].mxu0 %vm791_vm3, %v2913_v16 }
 0x192   : > { %2434 = vmatprep.mubr.msk.bf16.mxu0 %vm2716_vm1, %v2715_v3 }
 0x1e9   : > { %v889_v33 = vpop.permute.xlu0 %888 }
 0x1ea   : > { %v894_v34 = vsel %vm791_vm3, %v889_v33, 0 }
 0x1eb   : > { %2427 = vmatpush3.bf16.xpose.msra.mxu1 %v894_v34 }
 0x1ec   : > { %2438 = vmatprep.subr.bf16.mxu1 %v2715_v3 }
 0x1ed   : > { %v939_v35 = vpop.permute.xlu1 %938  ;;  %v989_v37 = vpop.permute.xlu0 %988 }
 0x1ee   : > { %v944_v36 = vsel %vm791_vm3, %v939_v35, 0  ;;  %v994_v38 = vsel %vm791_vm3, %v989_v37, 0 }
 0x1ef   : > { %2433 = vmatpush3.bf16.xpose.msra.mxu0 %v944_v36 }
 0x1f0   : > { %2444 = vmatprep.subr.bf16.mxu0 %v2715_v3 }
 0x1f1   : > { %v1039_v39 = vpop.permute.xlu1 %1038  ;;  %v1089_v41 = vpop.permute.xlu0 %1088 }
 0x1f2   : > { %2429 = vmatmul.mubr.msk.bf16.vlgmr.msra.gmra.mrb[0].mxu1 %vm791_vm3, %v778_v18  ;;  %v1044_v40 = vsel %vm791_vm3, %v1039_v39, 0  ;;  %v1094_v43 = vsel %vm791_vm3, %v1089_v41, 0 }
 0x1f3   : > { %2439 = vmatpush3.bf16.xpose.msra.mxu1 %v994_v38  ;;  %2440 = vmatprep.mubr.msk.bf16.mxu1 %vm2716_vm1, %v2715_v3 }
 0x1f4   : > { %2450 = vmatprep.subr.bf16.mxu1 %v2715_v3 }
 0x1f5   : > { %v1139_v42 = vpop.permute.xlu1 %1138 }
 0x1f6   : > { %2435 = vmatmul.mubr.msk.bf16.vlgmr.msra.gmra.mrb[12].mxu0 %vm791_vm3, %v780_v21  ;;  %v1144_v44 = vsel %vm791_vm3, %v1139_v42, 0 }
 0x1f7   : > { %2445 = vmatpush3.bf16.xpose.msra.mxu0 %v1044_v40  ;;  %2446 = vmatprep.mubr.msk.bf16.mxu0 %vm2716_vm1, %v2715_v3 }
 0x1f8   : > { %2456 = vmatprep.subr.bf16.mxu0 %v2715_v3 }
 0x1f9   : > { %v1283_v45 = vpop.permute.xlu1 %1282 }
 0x1fa   : > { %2441 = vmatmul.mubr.msk.bf16.vlgmr.msra.gmra.mrb[4].mxu1 %vm791_vm3, %v782_v17  ;;  %v1289_v46 = vsel %vm1287_vm4, %v1283_v45, 0 }
 0x1fb   : > { %2451 = vmatpush3.bf16.xpose.msra.mxu1 %v1094_v43  ;;  %2452 = vmatprep.mubr.msk.bf16.mxu1 %vm2716_vm1, %v2715_v3 }
 0x1fc   : > { %2462 = vmatprep.subr.bf16.mxu1 %v2715_v3 }
 0x1fe   : > { %2447 = vmatmul.mubr.msk.bf16.vlgmr.msra.gmra.mrb[16].mxu0 %vm791_vm3, %v784_v20 }
 0x1ff   : > { %2457 = vmatpush3.bf16.xpose.msra.mxu0 %v1144_v44  ;;  %2458 = vmatprep.mubr.msk.bf16.mxu0 %vm2716_vm1, %v2715_v3 }
 0x200   : > { %2468 = vmatprep.subr.bf16.mxu0 %v2715_v3 }
 0x202   : > { %2453 = vmatmul.mubr.msk.bf16.vlgmr.msra.gmra.mrb[8].mxu1 %vm791_vm3, %v786_v24 }
 0x203   : > { %2463 = vmatpush3.bf16.msra.mxu1 %v1289_v46  ;;  %2464 = vmatprep.mubr.msk.bf16.mxu1 %vm2716_vm1, %v2715_v3 }
 0x204   : > { %2474 = vmatprep.subr.bf16.mxu1 %v2715_v3 }
 0x206   : > { %2459 = vmatmul.mubr.msk.bf16.vlgmr.msra.gmra.mrb[20].mxu0 %vm791_vm3, %v788_v27 }
 0x207   : > { %2470 = vmatprep.mubr.msk.bf16.mxu0 %vm2716_vm1, %v2715_v3 }
 0x25c   : > { %v832_v47 = vpop.f32.mrb[4].mxu0 }
 0x25d   : > { %v2418_v48 = vpop.f32.mrb[5].mxu0  ;;  %v1186_v49 = vsel %vm791_vm3, %v832_v47, -inf }
 0x25e   : > { %1187 = vmax.xlane.f32.xlu0 %v1186_v49  ;;  %v835_v50 = vpop.f32.mrb[6].mxu0 }
 0x25f   : > { %v2419_v51 = vpop.f32.mrb[7].mxu0 }
 0x264   : > { %v880_v52 = vpop.f32.mrb[8].mxu0 }
 0x265   : > { %v2424_v53 = vpop.f32.mrb[9].mxu0  ;;  %v1189_v54 = vsel %vm791_vm3, %v880_v52, -inf }
 0x266   : > { %1190 = vmax.xlane.f32.xlu1 %v1189_v54  ;;  %v883_v55 = vpop.f32.mrb[10].mxu0 }
 0x267   : > { %v2425_v56 = vpop.f32.mrb[11].mxu0 }
 0x2c5   : > { %v930_v57 = vpop.f32.mrb[0].mxu1 }
 0x2c6   : > { %v2430_v58 = vpop.f32.mrb[1].mxu1  ;;  %v1192_v59 = vsel %vm791_vm3, %v930_v57, -inf }
 0x2c7   : > { %v933_v60 = vpop.f32.mrb[2].mxu1  ;;  %1193 = vmax.xlane.f32.xlu0 %v1192_v59 }
 0x2c8   : > { %v2431_v61 = vpop.f32.mrb[3].mxu1 }
 0x2c9   : > { %v980_v62 = vpop.f32.mrb[12].mxu0 }
 0x2ca   : > { %v2436_v63 = vpop.f32.mrb[13].mxu0  ;;  %v1195_v0 = vsel %vm791_vm3, %v980_v62, -inf }
 0x2cb   : > { %1196 = vmax.xlane.f32.xlu0 %v1195_v0  ;;  %v983_v1 = vpop.f32.mrb[14].mxu0 }
 0x2cc   : > { %v2437_v2 = vpop.f32.mrb[15].mxu0 }
 0x2cd   : > { %v2985_v4 = vpop.f32.mrb[4].mxu1 }
 0x2ce   : > { %v2442_v7 = vpop.f32.mrb[5].mxu1  ;;  %v1198_v8 = vsel %vm791_vm3, %v2985_v4, -inf }
 0x2cf   : > { %v1033_v9 = vpop.f32.mrb[6].mxu1  ;;  %1199 = vmax.xlane.f32.xlu1 %v1198_v8 }
 0x2d0   : > { %v2443_v10 = vpop.f32.mrb[7].mxu1 }
 0x2d1   : > { %v2989_v11 = vpop.f32.mrb[16].mxu0 }
 0x2d2   : > { %v2448_v12 = vpop.f32.mrb[17].mxu0  ;;  %v1201_v13 = vsel %vm791_vm3, %v2989_v11, -inf }
 0x2d3   : > { %1202 = vmax.xlane.f32.xlu0 %v1201_v13  ;;  %v1083_v14 = vpop.f32.mrb[18].mxu0 }
 0x2d4   : > { %v2449_v15 = vpop.f32.mrb[19].mxu0 }
 0x2d5   : > { %v1130_v17 = vpop.f32.mrb[8].mxu1 }
 0x2d6   : > { %v2454_v18 = vpop.f32.mrb[9].mxu1  ;;  %v1204_v20 = vsel %vm791_vm3, %v1130_v17, -inf }
 0x2d7   : > { %v1133_v21 = vpop.f32.mrb[10].mxu1  ;;  %1205 = vmax.xlane.f32.xlu1 %v1204_v20 }
 0x2d8   : > { %v2455_v24 = vpop.f32.mrb[11].mxu1 }
 0x2d9   : > { %v1180_v27 = vpop.f32.mrb[20].mxu0 }
 0x2da   : > { %v2460_v28 = vpop.f32.mrb[21].mxu0  ;;  %v1207_v30 = vsel %vm791_vm3, %v1180_v27, -inf }
 0x2db   : > { %1208 = vmax.xlane.f32.xlu0 %v1207_v30  ;;  %v1183_v31 = vpop.f32.mrb[22].mxu0 }
 0x2dc   : > { %v2461_v32 = vpop.f32.mrb[23].mxu0 }
 0x2e8   : > { %1379 = vrot.lane.b32.xlu1 %v2919_v19, %s2721_s28 }
 0x2eb   : > { %v1188_v33 = vpop.xlane.xlu0 %1187 }
 0x2ec   : > { %1427 = vrot.lane.b32.xlu1 %v2924_v23, %s2721_s28  ;;  %v1210_v35 = vsub.f32 %v832_v47, %v1188_v33 }
 0x2ee   : > { %v1218_v37 = vmul.f32 1.442695, %v1210_v35 }
 0x2f0   : > { %2617 = vpow2.f32 %v1218_v37 }
 0x2f1   : > { %1331 = vrot.lane.b32.xlu0 %v2913_v16, %s2721_s28 }
 0x2f3   : > { %v1191_v34 = vpop.xlane.xlu1 %1190 }
 0x2f4   : > { %v1211_v36 = vsub.f32 %v880_v52, %v1191_v34 }
 0x2f6   : > { %v1220_v38 = vmul.f32 1.442695, %v1211_v36 }
 0x2f8   : > { %2619 = vpow2.f32 %v1220_v38 }
 0x2fa   : > { %v2618_v39 = vpop.eup %2617 }
 0x2fb   : > { %v1234_v41 = vsel %vm791_vm3, %v2618_v39, 0.0 }
 0x302   : > { %v2620_v40 = vpop.eup %2619 }
 0x303   : > { %v1237_v19 = vsel %vm791_vm3, %v2620_v40, 0.0 }
 0x310   : > { %1235 = vadd.xlane.f32.xlu1 %v1234_v41  ;;  %1238 = vadd.xlane.f32.xlu0 %v1237_v19 }
 0x354   : > { %v1194_v23 = vpop.xlane.xlu0 %1193 }
 0x355   : > { %v1212_v42 = vsub.f32 %v930_v57, %v1194_v23 }
 0x357   : > { %v1222_v43 = vmul.f32 1.442695, %v1212_v42 }
 0x358   : > { %v1197_v16 = vpop.xlane.xlu0 %1196 }
 0x359   : > { %2621 = vpow2.f32 %v1222_v43  ;;  %v1213_v44 = vsub.f32 %v980_v62, %v1197_v16 }
 0x35b   : > { %v1224_v45 = vmul.f32 1.442695, %v1213_v44 }
 0x35c   : > { %v1200_v54 = vpop.xlane.xlu1 %1199 }
 0x35d   : > { %2623 = vpow2.f32 %v1224_v45  ;;  %v1214_v55 = vsub.f32 %v2985_v4, %v1200_v54 }
 0x35f   : > { %v1226_v58 = vmul.f32 1.442695, %v1214_v55 }
 0x360   : > { %v1203_v47 = vpop.xlane.xlu0 %1202 }
 0x361   : > { %v1215_v57 = vsub.f32 %v2989_v11, %v1203_v47  ;;  %2625 = vpow2.f32 %v1226_v58 }
 0x363   : > { %v3003_v46 = vpop.eup %2621  ;;  %v1228_v60 = vmul.f32 1.442695, %v1215_v57 }
 0x364   : > { %v1240_v48 = vsel %vm791_vm3, %v3003_v46, 0.0  ;;  %v1206_v56 = vpop.xlane.xlu1 %1205 }
 0x365   : > { %1241 = vadd.xlane.f32.xlu1 %v1240_v48  ;;  %v1216_v59 = vsub.f32 %v1130_v17, %v1206_v56  ;;  %2627 = vpow2.f32 %v1228_v60 }
 0x367   : > { %v3007_v49 = vpop.eup %2623  ;;  %v1230_v61 = vmul.f32 1.442695, %v1216_v59 }
 0x368   : > { %v1209_v50 = vpop.xlane.xlu0 %1208  ;;  %v1243_v51 = vsel %vm791_vm3, %v3007_v49, 0.0  ;;  %v1380_v0 = vpop.permute.xlu1 %1379 }
 0x369   : > { %1244 = vadd.xlane.f32.xlu0 %v1243_v51  ;;  %v1217_v62 = vsub.f32 %v1180_v27, %v1209_v50  ;;  %2629 = vpow2.f32 %v1230_v61  ;;  %v1385_v21 = vsel %vm1287_vm4, %v1380_v0, 0 }
 0x36b   : > { %v1232_v63 = vmul.f32 1.442695, %v1217_v62 }
 0x36c   : > { %v1332_v52 = vpop.permute.xlu0 %1331  ;;  %v1428_v1 = vpop.permute.xlu1 %1427 }
 0x36d   : > { %v1337_v53 = vsel %vm1287_vm4, %v1332_v52, 0  ;;  %2631 = vpow2.f32 %v1232_v63  ;;  %v1433_v24 = vsel %vm1287_vm4, %v1428_v1, 0 }
 0x36e   : > { %2469 = vmatpush3.bf16.msra.mxu0 %v1337_v53 }
 0x36f   : > { %2480 = vmatprep.subr.bf16.mxu0 %v2715_v3 }
 0x376   : > { %1523 = vrot.lane.b32.xlu1 %v2928_v25, %s2721_s28  ;;  %v3019_v25 = vpop.eup %2625 }
 0x377   : > { %v1246_v2 = vsel %vm791_vm3, %v3019_v25, 0.0 }
 0x37f   : > { %1475 = vrot.lane.b32.xlu0 %v2922_v22, %s2721_s28  ;;  %v3021_v22 = vpop.eup %2627 }
 0x380   : > { %v3025_v4 = vpop.eup %2629  ;;  %v1249_v10 = vsel %vm791_vm3, %v3021_v22, 0.0 }
 0x381   : > { %v1252_v9 = vsel %vm791_vm3, %v3025_v4, 0.0  ;;  %v3031_v11 = vpop.eup %2631 }
 0x382   : > { %v1255_v12 = vsel %vm791_vm3, %v3031_v11, 0.0 }
 0x39a   : > { %1247 = vadd.xlane.f32.xlu1 %v1246_v2 }
 0x39d   : > { %v1236_v7 = vpop.xlane.xlu1 %1235  ;;  %v1239_v8 = vpop.xlane.xlu0 %1238 }
 0x39e   : > { %2633 = vrcp.f32 %v1236_v7  ;;  %1253 = vadd.xlane.f32.xlu1 %v1252_v9  ;;  %1250 = vadd.xlane.f32.xlu0 %v1249_v10  ;;  %v2605_v9 = vld [vmem:[%s2843_s21] sm:$0xff]  }
 0x39f   : > { %2635 = vrcp.f32 %v1239_v8 }
 0x3a2   : > { %1256 = vadd.xlane.f32.xlu0 %v1255_v12 }
 0x3a8   : > { %v2634_v13 = vpop.eup %2633 }
 0x3a9   : > { %v2636_v14 = vpop.eup %2635  ;;  %v1266_v15 = vmul.f32 %v2634_v13, %v2618_v39 }
 0x3aa   : > { %v1267_v17 = vmul.f32 %v2636_v14, %v2620_v40  ;;  %v2606_v14 = vld [vmem:[%s2843_s21 + $0x8] sm:$0xff]  }
 0x3ab   : > { %v1274_v18 = vpack.c.bf16 %v1266_v15, %v1266_v15 }
 0x3ac   : > { %v1275_v20 = vpack.c.bf16 %v1267_v17, %v1267_v17 }
 0x3ad   : > { %2465 = vmatmul.mubr.msk.bf16.vlgmr.msra.gmra.mrb[12].mxu1 %vm791_vm3, %v1274_v18 }
 0x3ae   : > { %2471 = vmatmul.mubr.msk.bf16.vlgmr.msra.gmra.mrb[24].mxu0 %vm791_vm3, %v1275_v20  ;;  %2475 = vmatpush3.bf16.msra.mxu1 %v1385_v21 }
 0x3af   : > { %2481 = vmatpush3.bf16.msra.mxu0 %v1433_v24  ;;  %1619 = vrot.lane.b32.xlu1 %v2934_v29, %s2721_s28 }
 0x3b0   : > { %2476 = vmatprep.mubr.msk.bf16.mxu1 %vm2716_vm1, %v2715_v3  ;;  %2486 = vmatprep.subr.bf16.mxu1 %v2715_v3 }
 0x3b1   : > { %2482 = vmatprep.mubr.msk.bf16.mxu0 %vm2716_vm1, %v2715_v3  ;;  %2492 = vmatprep.subr.bf16.mxu0 %v2715_v3 }
 0x3b8   : > { %1571 = vrot.lane.b32.xlu0 %v2930_v26, %s2721_s28 }
 0x3f2   : > { %v1242_v27 = vpop.xlane.xlu1 %1241 }
 0x3f3   : > { %2637 = vrcp.f32 %v1242_v27 }
 0x3f6   : > { %v1245_v28 = vpop.xlane.xlu0 %1244  ;;  %v1524_v36 = vpop.permute.xlu1 %1523 }
 0x3f7   : > { %2639 = vrcp.f32 %v1245_v28  ;;  %v1529_v37 = vsel %vm1287_vm4, %v1524_v36, 0 }
 0x3fa   : > { %v1476_v31 = vpop.permute.xlu0 %1475 }
 0x3fb   : > { %v1481_v35 = vsel %vm1287_vm4, %v1476_v31, 0 }
 0x3fd   : > { %v2638_v30 = vpop.eup %2637 }
 0x3fe   : > { %v1268_v29 = vmul.f32 %v2638_v30, %v3003_v46 }
 0x400   : > { %v1276_v32 = vpack.c.bf16 %v1268_v29, %v1268_v29 }
 0x401   : > { %v2640_v33 = vpop.eup %2639 }
 0x402   : > { %v1269_v34 = vmul.f32 %v2640_v33, %v3007_v49  ;;  %2477 = vmatmul.mubr.msk.bf16.vlgmr.msra.gmra.mrb[16].mxu1 %vm791_vm3, %v1276_v32 }
 0x403   : > { %2487 = vmatpush3.bf16.msra.mxu1 %v1481_v35  ;;  %2488 = vmatprep.mubr.msk.bf16.mxu1 %vm2716_vm1, %v2715_v3 }
 0x404   : > { %v1277_v26 = vpack.c.bf16 %v1269_v34, %v1269_v34  ;;  %2498 = vmatprep.subr.bf16.mxu1 %v2715_v3 }
 0x406   : > { %2483 = vmatmul.mubr.msk.bf16.vlgmr.msra.gmra.mrb[28].mxu0 %vm791_vm3, %v1277_v26 }
 0x407   : > { %2493 = vmatpush3.bf16.msra.mxu0 %v1529_v37  ;;  %2494 = vmatprep.mubr.msk.bf16.mxu0 %vm2716_vm1, %v2715_v3 }
 0x408   : > { %2504 = vmatprep.subr.bf16.mxu0 %v2715_v3 }
 0x427   : > { %v1248_v38 = vpop.xlane.xlu1 %1247 }
 0x428   : > { %2641 = vrcp.f32 %v1248_v38 }
 0x42b   : > { %v1254_v39 = vpop.xlane.xlu1 %1253  ;;  %v1251_v40 = vpop.xlane.xlu0 %1250 }
 0x42c   : > { %2643 = vrcp.f32 %v1254_v39 }
 0x42d   : > { %2645 = vrcp.f32 %v1251_v40 }
 0x42f   : > { %v1257_v41 = vpop.xlane.xlu0 %1256  ;;  %v1620_v48 = vpop.permute.xlu1 %1619 }
 0x430   : > { %2647 = vrcp.f32 %v1257_v41  ;;  %v1625_v51 = vsel %vm1287_vm4, %v1620_v48, 0 }
 0x432   : > { %v2642_v19 = vpop.eup %2641 }
 0x433   : > { %v1270_v23 = vmul.f32 %v2642_v19, %v3019_v25  ;;  %v1572_v42 = vpop.permute.xlu0 %1571 }
 0x434   : > { %v1577_v45 = vsel %vm1287_vm4, %v1572_v42, 0 }
 0x435   : > { %v1278_v43 = vpack.c.bf16 %v1270_v23, %v1270_v23 }
 0x436   : > { %v2644_v16 = vpop.eup %2643 }
 0x437   : > { %v2646_v44 = vpop.eup %2645  ;;  %2489 = vmatmul.mubr.msk.bf16.vlgmr.msra.gmra.mrb[20].mxu1 %vm791_vm3, %v1278_v43  ;;  %v1272_v47 = vmul.f32 %v2644_v16, %v3025_v4 }
 0x438   : > { %v1271_v46 = vmul.f32 %v2646_v44, %v3021_v22  ;;  %2499 = vmatpush3.bf16.msra.mxu1 %v1577_v45  ;;  %2500 = vmatprep.mubr.msk.bf16.mxu1 %vm2716_vm1, %v2715_v3 }
 0x439   : > { %2510 = vmatprep.subr.bf16.mxu1 %v2715_v3  ;;  %v1280_v52 = vpack.c.bf16 %v1272_v47, %v1272_v47  ;;  %v2322_v47 = vld [vmem:[%s3242_s1] ss:$0 sm:$0xff] }
 0x43a   : > { %v1279_v49 = vpack.c.bf16 %v1271_v46, %v1271_v46  ;;  %v2648_v50 = vpop.eup %2647 }
 0x43b   : > { %v1273_v53 = vmul.f32 %v2648_v50, %v3031_v11 }
 0x43c   : > { %2495 = vmatmul.mubr.msk.bf16.vlgmr.msra.gmra.mrb[32].mxu0 %vm791_vm3, %v1279_v49 }
 0x43d   : > { %2505 = vmatpush3.bf16.msra.mxu0 %v1625_v51  ;;  %2506 = vmatprep.mubr.msk.bf16.mxu0 %vm2716_vm1, %v2715_v3  ;;  %v1281_v54 = vpack.c.bf16 %v1273_v53, %v1273_v53 }
 0x43e   : > { %2518 = vmatprep.subr.bf16.mxu0 %v2715_v3 }
 0x43f   : > { %2501 = vmatmul.mubr.msk.bf16.vlgmr.msra.gmra.mrb[24].mxu1 %vm791_vm3, %v1280_v52 }
 0x440   : > { %2514 = vmatprep.mubr.msk.bf16.mxu1 %vm2716_vm1, %v2715_v3  ;;  %2511 = vmatpush3.bf16.msra.mxu1 %v2605_v9  ;;  %v2613_v9 = vld [vmem:[%s2870_s15 + $0x20] sm:$0xff]  }
 0x441   : > { %2512 = vmatprep.subr.bf16.mxu1 %v2715_v3 }
 0x444   : > { %2507 = vmatmul.mubr.msk.bf16.vlgmr.msra.gmra.mrb[36].mxu0 %vm791_vm3, %v1281_v54  ;;  %2513 = vmatpush3.bf16.msra.mxu1 %v2606_v14 }
 0x445   : > { %2522 = vmatprep.mubr.msk.bf16.mxu0 %vm2716_vm1, %v2715_v3  ;;  %2526 = vmatprep.subr.bf16.mxu1 %v2715_v3 }
 0x480   : > { %v1325_v55 = vpop.f32.mrb[12].mxu1 }
 0x481   : > { %v1373_v56 = vpop.f32.mrb[24].mxu0  ;;  %v2466_v57 = vpop.f32.mrb[13].mxu1 }
 0x482   : > { %v2472_v58 = vpop.f32.mrb[25].mxu0  ;;  %v1328_v59 = vpop.f32.mrb[14].mxu1 }
 0x483   : > { %v1376_v60 = vpop.f32.mrb[26].mxu0  ;;  %v2467_v61 = vpop.f32.mrb[15].mxu1 }
 0x484   : > { %v2473_v62 = vpop.f32.mrb[27].mxu0 }
 0x4d5   : > { %v1421_v63 = vpop.f32.mrb[16].mxu1 }
 0x4d6   : > { %v2478_v0 = vpop.f32.mrb[17].mxu1 }
 0x4d7   : > { %v1424_v25 = vpop.f32.mrb[18].mxu1 }
 0x4d8   : > { %v2479_v22 = vpop.f32.mrb[19].mxu1 }
 0x4d9   : > { %v1469_v1 = vpop.f32.mrb[28].mxu0  ;;  %v2607_v22 = vld [vmem:[%s2860_s29] sm:$0xff]  }
 0x4da   : > { %v2588_v2 = vpack.i.bf16 %v1469_v1, %v1421_v63  ;;  %v2484_v4 = vpop.f32.mrb[29].mxu0  ;;  %2519 = vmatpush3.bf16.msra.mxu0 %v2607_v22  ;;  %v2608_v1 = vld [vmem:[%s2860_s29 + $0x8] sm:$0xff]  }
 0x4db   : > { %v1472_v7 = vpop.f32.mrb[30].mxu0  ;;  %2520 = vmatprep.subr.bf16.mxu0 %v2715_v3  ;;  %v2610_v4 = vld [vmem:[%s2870_s15 + $0x8] sm:$0xff]  }
 0x4dc   : > { %2589 = vrot.lane.b32.xlu0 %v2588_v2, %s2722_s16  ;;  %v2485_v8 = vpop.f32.mrb[31].mxu0  ;;  %v2609_v2 = vld [vmem:[%s2870_s15] sm:$0xff]   ;;  %v2611_v7 = vld [vmem:[%s2870_s15 + $0x10] sm:$0xff]  }
 0x4dd   : > { %v2612_v8 = vld [vmem:[%s2870_s15 + $0x18] sm:$0xff]  }
 0x4de   : > { %2521 = vmatpush3.bf16.msra.mxu0 %v2608_v1  ;;  %v2341_v1 = vld [vmem:[%s686_s27] ss:$0 sm:$0xff] }
 0x50a   : > { %v1517_v10 = vpop.f32.mrb[20].mxu1 }
 0x50b   : > { %v2490_v11 = vpop.f32.mrb[21].mxu1 }
 0x50c   : > { %v1520_v12 = vpop.f32.mrb[22].mxu1 }
 0x50d   : > { %v2491_v13 = vpop.f32.mrb[23].mxu1 }
 0x50f   : > { %v1565_v15 = vpop.f32.mrb[32].mxu0 }
 0x510   : > { %v2593_v17 = vpack.i.bf16 %v1565_v15, %v1517_v10  ;;  %v2496_v18 = vpop.f32.mrb[33].mxu0  ;;  %v2614_v10 = vld [vmem:[%s2870_s15 + $0x28] sm:$0xff]  }
 0x511   : > { %v1568_v20 = vpop.f32.mrb[34].mxu0 }
 0x512   : > { %2594 = vrot.lane.b32.xlu1 %v2593_v17, %s2723_s17  ;;  %v2497_v21 = vpop.f32.mrb[35].mxu0  ;;  %v1613_v24 = vpop.f32.mrb[24].mxu1  ;;  %v2326_v20 = vld [vmem:[%s3243_s26] ss:$0 sm:$0xff]  ;;  %s3245_s17 = scalar_lea.vmem %s3216_s8, %s2830_s23  ;;  %s3246_s23 = sld [smem:[#allocation12_spill]] (!%p2343_p6) }
 0x513   : > { %v2502_v27 = vpop.f32.mrb[25].mxu1 }
 0x514   : > { %v1616_v28 = vpop.f32.mrb[26].mxu1 }
 0x515   : > { %v2503_v30 = vpop.f32.mrb[27].mxu1 }
 0x516   : > { %v2327_v30 = vld [vmem:[%s3244_s25] ss:$0 sm:$0xff] }
 0x517   : > { %v1661_v29 = vpop.f32.mrb[36].mxu0 }
 0x518   : > { %v2598_v31 = vpack.i.bf16 %v1661_v29, %v1613_v24  ;;  %v2508_v32 = vpop.f32.mrb[37].mxu0 }
 0x519   : > { %v1664_v33 = vpop.f32.mrb[38].mxu0 }
 0x51a   : > { %2599 = vrot.lane.b32.xlu0 %v2598_v31, %s2724_s19  ;;  %v2509_v34 = vpop.f32.mrb[39].mxu0 }
 0x51b   : > { %v2615_v34 = vld [vmem:[%s2870_s15 + $0x30] sm:$0xff]  }
 0x54e   : > { %v2590_v35 = vpop.permute.xlu0 %2589 }
 0x54f   : > { %v2592_v26 = vunpack.i.h.bf16 %v2590_v35  ;;  %v2591_v37 = vunpack.i.l.bf16 %v2590_v35  ;;  %v2616_v35 = vld [vmem:[%s2870_s15 + $0x38] sm:$0xff]  }
 0x551   : > { %v1692_v41 = vsel %vm791_vm3, %v1373_v56, %v2592_v26  ;;  %v1691_v19 = vsel %vm791_vm3, %v1325_v55, %v2591_v37 }
 0x584   : > { %v2595_v36 = vpop.permute.xlu1 %2594 }
 0x585   : > { %v2597_v38 = vunpack.i.h.bf16 %v2595_v36  ;;  %v2596_v39 = vunpack.i.l.bf16 %v2595_v36  ;;  %v2328_v36 = vld [vmem:[%s3245_s17] ss:$0 sm:$0xff] }
 0x587   : > { %v1695_v43 = vsel %vm1693_vm5, %v1692_v41, %v2597_v38  ;;  %v1694_v16 = vsel %vm1693_vm5, %v1691_v19, %v2596_v39 }
 0x58c   : > { %v2600_v40 = vpop.permute.xlu0 %2599 }
 0x58d   : > { %v2602_v23 = vunpack.i.h.bf16 %v2600_v40  ;;  %v2601_v42 = vunpack.i.l.bf16 %v2600_v40 }
 0x58f   : > { %v1698_v44 = vsel %vm1696_vm6, %v1695_v43, %v2602_v23  ;;  %v1697_v45 = vsel %vm1696_vm6, %v1694_v16, %v2601_v42 }
 0x590   : > { %v1699_v46 = vpack.c.bf16 %v1698_v44, %v1697_v45 }
 0x592   : > { %2515 = vmatmul.mubr.msk.bf16.vlgmr.msra.gmra.mrb[28].mxu1 %vm726_vm2, %v1699_v46 }
 0x593   : > { %2542 = vmatprep.mubr.msk.bf16.mxu1 %vm2716_vm1, %v2715_v3  ;;  %2527 = vmatpush3.bf16.msra.mxu1 %v2609_v2 }
 0x594   : > { %2528 = vmatprep.subr.bf16.mxu1 %v2715_v3 }
 0x597   : > { %2529 = vmatpush3.bf16.msra.mxu1 %v2610_v4 }
 0x598   : > { %2530 = vmatprep.subr.bf16.mxu1 %v2715_v3 }
 0x59b   : > { %2531 = vmatpush3.bf16.msra.mxu1 %v2611_v7  ;;  %v2342_v7 = vld [vmem:[%s689_s13] ss:$0 sm:$0xff] }
 0x59c   : > { %2532 = vmatprep.subr.bf16.mxu1 %v2715_v3 }
 0x59f   : > { %2533 = vmatpush3.bf16.msra.mxu1 %v2612_v8 }
 0x5a0   : > { %2534 = vmatprep.subr.bf16.mxu1 %v2715_v3 }
 0x5a3   : > { %2535 = vmatpush3.bf16.msra.mxu1 %v2613_v9 }
 0x5a4   : > { %2536 = vmatprep.subr.bf16.mxu1 %v2715_v3 }
 0x5a7   : > { %2537 = vmatpush3.bf16.msra.mxu1 %v2614_v10 }
 0x5a8   : > { %2538 = vmatprep.subr.bf16.mxu1 %v2715_v3 }
 0x5ab   : > { %2539 = vmatpush3.bf16.msra.mxu1 %v2615_v34 }
 0x5ac   : > { %2540 = vmatprep.subr.bf16.mxu1 %v2715_v3  ;;  %v2332_v3 = vld [vmem:[%s683_s0] ss:$0 sm:$0xff] }
 0x5af   : > { %2541 = vmatpush3.bf16.msra.mxu1 %v2616_v35 }
 0x665   : > { %v1760_v48 = vpop.f32.mrb[28].mxu1 }
 0x666   : > { %v1761_v49 = vadd.f32 %v2322_v47, %v1760_v48  ;;  %v2516_v50 = vpop.f32.mrb[29].mxu1 }
 0x667   : > { %v1763_v51 = vpop.f32.mrb[30].mxu1 }
 0x668   : > { %v1764_v52 = vadd.f32 %v2322_v47, %v1763_v51  ;;  %v2517_v53 = vpop.f32.mrb[31].mxu1  ;;  %v1767_v54 = vadd.f32 %v1761_v49, %v2895_v5 }
 0x66a   : > { %v1771_v55 = vsel %vm726_vm2, %v1767_v54, 0.0  ;;  %v1768_v56 = vadd.f32 %v1764_v52, %v2897_v6 }
 0x66b   : > { %1772 = vadd.xlane.f32.xlu1 %v1771_v55 }
 0x66c   : > { %v1774_v57 = vsel %vm726_vm2, %v1768_v56, 0.0 }
 0x66d   : > { %1775 = vadd.xlane.f32.xlu0 %v1774_v57 }
 0x6f8   : > { %v1773_v58 = vpop.xlane.xlu1 %1772 }
 0x6f9   : > { %v1778_v59 = vmul.f32 0.03125, %v1773_v58 }
 0x6fa   : > { %v1776_v60 = vpop.xlane.xlu0 %1775 }
 0x6fb   : > { %v1780_v61 = vsub.f32 %v1767_v54, %v1778_v59  ;;  %v1779_v62 = vmul.f32 0.03125, %v1776_v60 }
 0x6fd   : > { %v1781_v63 = vsub.f32 %v1768_v56, %v1779_v62  ;;  %v1782_v0 = vmul.f32 %v1780_v61, %v1780_v61 }
 0x6ff   : > { %v1784_v5 = vsel %vm726_vm2, %v1782_v0, 0.0  ;;  %v1783_v25 = vmul.f32 %v1781_v63, %v1781_v63 }
 0x700   : > { %1785 = vadd.xlane.f32.xlu0 %v1784_v5 }
 0x701   : > { %v1787_v6 = vsel %vm726_vm2, %v1783_v25, 0.0 }
 0x702   : > { %1788 = vadd.xlane.f32.xlu1 %v1787_v6 }
 0x78d   : > { %v1786_v11 = vpop.xlane.xlu0 %1785 }
 0x78e   : > { %v1790_v12 = vmul.f32 0.03125, %v1786_v11 }
 0x78f   : > { %v1789_v13 = vpop.xlane.xlu1 %1788 }
 0x790   : > { %v1792_v14 = vadd.f32 1e-05, %v1790_v12  ;;  %v1791_v15 = vmul.f32 0.03125, %v1789_v13 }
 0x792   : > { %2649 = vrsqrt.f32 %v1792_v14  ;;  %v1793_v17 = vadd.f32 1e-05, %v1791_v15 }
 0x794   : > { %2651 = vrsqrt.f32 %v1793_v17 }
 0x79c   : > { %v2650_v18 = vpop.eup %2649 }
 0x79d   : > { %v1796_v21 = vmul.f32 %v2650_v18, %v1780_v61 }
 0x79e   : > { %v2652_v24 = vpop.eup %2651 }
 0x79f   : > { %v1804_v27 = vmul.f32 %v2326_v20, %v1796_v21  ;;  %v1797_v28 = vmul.f32 %v2652_v24, %v1781_v63 }
 0x7a1   : > { %v1805_v29 = vmul.f32 %v2326_v20, %v1797_v28  ;;  %v1812_v31 = vadd.f32 %v2327_v30, %v1804_v27 }
 0x7a3   : > { %v1813_v32 = vadd.f32 %v2327_v30, %v1805_v29 }
 0x7a5   : > { %v1814_v33 = vpack.c.bf16 %v1813_v32, %v1812_v31 }
 0x7a7   : > { %2523 = vmatmul.mubr.msk.bf16.vlgmr.msra.gmra.mrb[40].mxu0 %vm726_vm2, %v1814_v33 }
 0x87a   : > { %v1875_v26 = vpop.f32.mrb[40].mxu0 }
 0x87b   : > { %v1876_v37 = vadd.f32 %v2328_v36, %v1875_v26  ;;  %v2524_v38 = vpop.f32.mrb[41].mxu0 }
 0x87c   : > { %v1878_v39 = vpop.f32.mrb[42].mxu0 }
 0x87d   : > { %v1879_v40 = vadd.f32 %v2328_v36, %v1878_v39  ;;  %v2525_v41 = vpop.f32.mrb[43].mxu0  ;;  %v1882_v19 = vmax.f32 %v1876_v37, 0.0  ;;  %v2344_v37 = vld [vmem:[%s3246_s23] ss:$0 sm:$0xff] (!%p2343_p6) }
 0x87e   : > { %v2345_v39 = vld [vmem:[%s3247_s30] ss:$0 sm:$0xff] (!%p2343_p6) }
 0x87f   : > { %v1883_v23 = vmax.f32 %v1879_v40, 0.0 }
 0x881   : > { %v1884_v42 = vpack.c.bf16 %v1883_v23, %v1882_v19 }
 0x883   : > { %2543 = vmatmul.mubr.bf16.vlgmr.msra.gmra.mrb[32].mxu1 %v1884_v42 }
 0x956   : > { %v1990_v43 = vpop.f32.mrb[32].mxu1 }
 0x957   : > { %v1991_v16 = vadd.f32 %v2332_v3, %v1990_v43  ;;  %v2544_v44 = vpop.f32.mrb[33].mxu1 }
 0x958   : > { %v1993_v45 = vpop.f32.mrb[34].mxu1 }
 0x959   : > { %v1994_v46 = vadd.f32 %v2332_v3, %v1993_v45  ;;  %v2545_v47 = vpop.f32.mrb[35].mxu1  ;;  %v1997_v48 = vadd.f32 %v1991_v16, %v1812_v31 }
 0x95b   : > { %v2001_v49 = vsel %vm726_vm2, %v1997_v48, 0.0  ;;  %v1998_v50 = vadd.f32 %v1994_v46, %v1813_v32 }
 0x95c   : > { %2002 = vadd.xlane.f32.xlu0 %v2001_v49 }
 0x95d   : > { %v2004_v51 = vsel %vm726_vm2, %v1998_v50, 0.0 }
 0x95e   : > { %2005 = vadd.xlane.f32.xlu1 %v2004_v51 }
 0x9e9   : > { %v2003_v52 = vpop.xlane.xlu0 %2002 }
 0x9ea   : > { %v2007_v53 = vmul.f32 0.03125, %v2003_v52 }
 0x9eb   : > { %v2006_v54 = vpop.xlane.xlu1 %2005 }
 0x9ec   : > { %v2009_v55 = vsub.f32 %v1997_v48, %v2007_v53  ;;  %v2008_v56 = vmul.f32 0.03125, %v2006_v54 }
 0x9ee   : > { %v2010_v57 = vsub.f32 %v1998_v50, %v2008_v56  ;;  %v2011_v58 = vmul.f32 %v2009_v55, %v2009_v55 }
 0x9f0   : > { %v2013_v59 = vsel %vm726_vm2, %v2011_v58, 0.0  ;;  %v2012_v60 = vmul.f32 %v2010_v57, %v2010_v57 }
 0x9f1   : > { %2014 = vadd.xlane.f32.xlu0 %v2013_v59 }
 0x9f2   : > { %v2016_v61 = vsel %vm726_vm2, %v2012_v60, 0.0 }
 0x9f3   : > { %2017 = vadd.xlane.f32.xlu1 %v2016_v61 }
 0xa7e   : > { %v2015_v62 = vpop.xlane.xlu0 %2014 }
 0xa7f   : > { %v2019_v63 = vmul.f32 0.03125, %v2015_v62 }
 0xa80   : > { %v2018_v0 = vpop.xlane.xlu1 %2017 }
 0xa81   : > { %v2021_v5 = vadd.f32 1e-05, %v2019_v63  ;;  %v2020_v25 = vmul.f32 0.03125, %v2018_v0 }
 0xa83   : > { %2653 = vrsqrt.f32 %v2021_v5  ;;  %v2022_v6 = vadd.f32 1e-05, %v2020_v25 }
 0xa85   : > { %2655 = vrsqrt.f32 %v2022_v6 }
 0xa8d   : > { %v2654_v22 = vpop.eup %2653 }
 0xa8e   : > { %v2025_v2 = vmul.f32 %v2654_v22, %v2009_v55 }
 0xa8f   : > { %v2656_v4 = vpop.eup %2655 }
 0xa90   : > { %v2033_v8 = vmul.f32 %v2341_v1, %v2025_v2  ;;  %v2026_v9 = vmul.f32 %v2656_v4, %v2010_v57  ;;  %2048 = sbr.rel (%p2343_p6) target bundleno = 3026 (0xbd2), region = 88 }
 0xa92   : > { %v2041_v10 = vadd.f32 %v2342_v7, %v2033_v8  ;;  %v2034_v11 = vmul.f32 %v2341_v1, %v2026_v9 }
 0xa94   : > { %2043 = vst.msk [vmem:[#allocation2] sm:$0xff] %vm726_vm2, %v2041_v10  ;;  %v2042_v12 = vadd.f32 %v2342_v7, %v2034_v11  ;;  %v2051_v13 = vsel (!%p2343_p6), %vm726_vm2, %v2041_v10, 0.0 }
 0xa95   : > { %2052 = vadd.xlane.f32.xlu0 (!%p2343_p6), %v2051_v13 }
 0xa96   : > { %2044 = vst.msk [vmem:[#allocation2 + $0x8] sm:$0xff] %vm726_vm2, %v2042_v12  ;;  %v2054_v14 = vsel (!%p2343_p6), %vm726_vm2, %v2042_v12, 0.0 }
 0xa99   : > { %2055 = vadd.xlane.f32.xlu0 %v2054_v14 }
 0xb22   : > { %v2053_v15 = vpop.xlane.xlu0 %2052 }
 0xb23   : > { %v2057_v17 = vmul.f32 0.03125, %v2053_v15 }
 0xb25   : > { %v2059_v18 = vsub.f32 %v2041_v10, %v2057_v17 }
 0xb26   : > { %v2056_v20 = vpop.xlane.xlu0 %2055 }
 0xb27   : > { %v2058_v21 = vmul.f32 0.03125, %v2056_v20  ;;  %v2061_v24 = vmul.f32 %v2059_v18, %v2059_v18 }
 0xb29   : > { %v2060_v27 = vsub.f32 %v2042_v12, %v2058_v21  ;;  %v2063_v28 = vsel %vm726_vm2, %v2061_v24, 0.0 }
 0xb2a   : > { %2064 = vadd.xlane.f32.xlu1 %v2063_v28 }
 0xb2b   : > { %v2062_v30 = vmul.f32 %v2060_v27, %v2060_v27 }
 0xb2d   : > { %v2066_v29 = vsel %vm726_vm2, %v2062_v30, 0.0 }
 0xb2e   : > { %2067 = vadd.xlane.f32.xlu1 %v2066_v29 }
 0xbb7   : > { %v2065_v31 = vpop.xlane.xlu1 %2064 }
 0xbb8   : > { %v2069_v32 = vmul.f32 0.03125, %v2065_v31 }
 0xbba   : > { %v2071_v33 = vadd.f32 1e-05, %v2069_v32 }
 0xbbb   : > { %v2068_v34 = vpop.xlane.xlu1 %2067 }
 0xbbc   : > { %2657 = vrsqrt.f32 %v2071_v33  ;;  %v2070_v35 = vmul.f32 0.03125, %v2068_v34 }
 0xbbe   : > { %v2072_v36 = vadd.f32 1e-05, %v2070_v35 }
 0xbc0   : > { %2659 = vrsqrt.f32 %v2072_v36 }
 0xbc6   : > { %v2658_v26 = vpop.eup %2657 }
 0xbc7   : > { %v2075_v38 = vmul.f32 %v2658_v26, %v2059_v18 }
 0xbc9   : > { %v2083_v40 = vmul.f32 %v2344_v37, %v2075_v38 }
 0xbca   : > { %v2660_v41 = vpop.eup %2659 }
 0xbcb   : > { %v2091_v19 = vadd.f32 %v2345_v39, %v2083_v40  ;;  %v2076_v23 = vmul.f32 %v2660_v41, %v2060_v27 }
 0xbcd   : > { %2093 = vst.msk [vmem:[#allocation3] sm:$0xff] %vm726_vm2, %v2091_v19  ;;  %v2084_v42 = vmul.f32 %v2344_v37, %v2076_v23 }
 0xbcf   : > { %v2092_v3 = vadd.f32 %v2345_v39, %v2084_v42 }
 0xbd1   : > { %2094 = vst.msk [vmem:[#allocation3 + $0x8] sm:$0xff] %vm726_vm2, %v2092_v3 }
 0xbd2 PF: > { %s3248_s26 = sld [smem:[#allocation7_spill]]  ;;  %s2725_s25 = smov [#allocation3]  }
 0xbd3   : > { %s2104_s24 = sshll.u32 %s2725_s25, 4  ;;  %s2105_s24 = int_to_ptr.vmem [resolvable:$true] %s2104_s24 }
 0xbd4   : > { %s2661_s28 = scalar_lea.vmem %s2105_s24, 256  ;;  %p2668_p11 = scmp.lt.s32.totalorder %s2105_s24, %s2105_s24 }
 0xbd5   : > { %p2662_p8 = scmp.ne.s32.totalorder %s2105_s24, %s2661_s28  ;;  %p2669_p12 = scmp.lt.s32.totalorder %s2661_s28, %s2661_s28 }
 0xbd7   : > { %p2670_p13 = por %p2669_p12, %p2668_p11 }
 0xbd8   : > { %s3249_s14 = sadd.s32 4294967295, %s3248_s26  }
 0xbd9   : > { %p3172_p7 = scmp.eq.s32.totalorder %s3249_s14, 1 }
 0xbdb   : > { %p2663_p9 = pnand %p2662_p8, %p3172_p7 }
 0xbdd   : > { %p2664_p10 = pneg %p2663_p9 }
 0xbdf   : > { %p2671_p0 = pnand %p2670_p13, %p2664_p10 }
 0xbe1   : > { %2674 = shalt.err (!%p2671_p0)
}
 0xbe2   : > { %s3251_s21 = sld [smem:[#allocation14_spill]] }
 0xbe8   : > { %s2675_s15 = scalar_lea.hbm %s3251_s21, 256 }
 0xbe9   : > { %p2676_p1 = scmp.ne.s32.totalorder %s3251_s21, %s2675_s15  ;;  %p2681_p4 = scmp.lt.u32.totalorder %s2675_s15, %s3251_s21 }
 0xbeb   : > { %p2677_p2 = pnand %p2676_p1, %p3172_p7 }
 0xbed   : > { %p2678_p3 = pneg %p2677_p2 }
 0xbef   : > { %p2683_p5 = pnand %p2681_p4, %p2678_p3 }
 0xbf1   : > { %2686 = shalt.err (!%p2683_p5)
}
 0xbf2   : > { %s2726_s18 = smov 128  }
 0xbf3   : > { %2547 = dma.vmem_to_hbm [thread:$0]  (%p3172_p7), %s2105_s24, 256, %s3251_s21, [#allocation4], %s2726_s18, %s2726_s18, %s2722_s16  }
 0xbf4   : > { %2700 = dma.done.wait (%p3172_p7), [#allocation4], 256  }
 0xbf5   : > { %2702 = vsyncadd (%p3172_p7), [#allocation4], 4294967040 }
 0xbf6 PF: > { %s3252_s29 = sld [smem:[#allocation7_spill]]  ;;  %s3253_s18 = sld [smem:[#allocation6_spill]] }
 0xbf7   : > { %s3254_s19 = sld [smem:[#allocation8_spill]] }
 0xbfc   : > { %s26_s20 = sadd.s32 1, %s3252_s29  }
 0xbfd   : > { %p23_p6 = scmp.ge.s32.totalorder %s26_s20, 4  }
 0xbff   :  { %25 = sbr.rel (!%p23_p6) target bundleno = 9 (0x9), region = 152 }
 0xc06   :  { %2120 = vsyncpa [#allocation4], 1 }
 0xc07   :  { %2122 = vsyncpa [#allocation4 + $0x1], 1 }

</bundles_post_ra>
